<compile_context>
chip_gen: v5e
topology: v5e:2x2
jax: 0.10.0
libtpu: 0.0.40
codegen_flags: <defaults>
</compile_context>

<pallas_src>
import functools

import jax
import jax.numpy as jnp
from jax.experimental import pallas as pl
from jax.experimental.pallas import tpu as pltpu


def _round_up(x, m):
    return ((x + m - 1) // m) * m


def _choose_batch_tile(B, block_b, min_grid=2):
    """Pick (tb, B_pad): tb multiple of 128, B_pad multiple of tb.

    Large tb amortizes the ~0.35 us/step pipeline overhead; but keep at least
    `min_grid` grid steps when the batch allows it so both v7x TensorCores get
    work on the "parallel" batch axis (no effect on v5e/v6e: single TC).
    """
    B128 = _round_up(max(B, 1), 128)
    tb = min(_round_up(block_b, 128), B128)
    if B128 // tb < min_grid and B128 >= min_grid * 128:
        tb = max(128, (B128 // min_grid) // 128 * 128)
    B_pad = _round_up(B128, tb)
    return tb, B_pad


# -----------------------------------------------------------------------------
# Kernel
# -----------------------------------------------------------------------------
def _ncf_kernel(n_fc, x_ref, w_ref, wo_ref, o_ref):
    """Fused NCF forward for one batch tile.

    x_ref  : (tb, P)            packed activations (ones lane at P-1)
    w_ref  : (n_fc, P, P)       padded FC weights, bias folded into ones-lane row
    wo_ref : (8, P) f32         row 0: W_out (MLP branch) + b_out at ones lane
                                row 1: W_out (MF lanes of x)
    o_ref  : (1, tb//128, 128)  sigmoid(logits), lane-dense narrow output
    """
    x = x_ref[...]
    h = x
    for k in range(n_fc):                           # static unrolled MXU chain
        h32 = jnp.dot(h, w_ref[k], preferred_element_type=jnp.float32)
        h32 = jnp.maximum(h32, 0.0)                 # ReLU in f32 (VPU)
        h = h32.astype(x.dtype)                     # bf16 re-feed for the MXU

    wo = wo_ref[...]                                # f32
    # Output head as VPU multiply + lane reduce (no N=1 matmul on the MXU).
    # b_out rides the ones lane of h (which stays 1.0 through the chain).
    hx = h.astype(jnp.float32) * wo[0:1, :] + x.astype(jnp.float32) * wo[1:2, :]
    g = o_ref.shape[1]                              # tb // 128
    logits = jnp.sum(hx.reshape(g, 128, hx.shape[-1]), axis=-1)   # (g, 128)
    o_ref[0] = jax.nn.sigmoid(logits).astype(o_ref.dtype)


# -----------------------------------------------------------------------------
# Parameter packing (done once, outside the hot path)
# -----------------------------------------------------------------------------
def pack_ncf_params(params, layers, latent_dim_mf, latent_dim_mlp,
                    compute_dtype=jnp.bfloat16):
    n_fc = len(layers) - 1
    d_mlp, d_mf = latent_dim_mlp, latent_dim_mf
    d_last = layers[-1]

    max_w = max([2 * d_mlp + d_mf] + list(layers))
    P = _round_up(max_w + 1, 128)               # +1 reserves the ones lane
    ones_lane = P - 1

    w_stack = jnp.zeros((n_fc, P, P), jnp.float32)
    for k in range(n_fc):
        in_k, out_k = layers[k], layers[k + 1]
        w_stack = w_stack.at[k, :in_k, :out_k].set(params[f"fc_w{k}"])
        # bias folded into the ones-lane row; ones lane propagates itself.
        w_stack = w_stack.at[k, ones_lane, :out_k].set(params[f"fc_b{k}"])
        w_stack = w_stack.at[k, ones_lane, ones_lane].set(1.0)
    w_stack = w_stack.astype(compute_dtype)

    wo = jnp.zeros((8, P), jnp.float32)
    out_w = params["out_w"][:, 0]               # (d_last + d_mf,)
    wo = wo.at[0, :d_last].set(out_w[:d_last])
    wo = wo.at[0, ones_lane].set(params["out_b"][0])      # b_out via ones lane
    wo = wo.at[1, 2 * d_mlp:2 * d_mlp + d_mf].set(out_w[d_last:])

    return {"w_stack": w_stack, "wo": wo, "P": P, "ones_lane": ones_lane}


# -----------------------------------------------------------------------------
# Wrapper
# -----------------------------------------------------------------------------
def ncf_forward(u, i, params, packed, layers, latent_dim_mf, latent_dim_mlp,
                *, block_b=2048, compute_dtype=jnp.bfloat16):
    """NCF forward. u, i: int32 index vectors of shape (B,). Returns (B, 1) f32."""
    d_mlp, d_mf = latent_dim_mlp, latent_dim_mf
    n_fc = len(layers) - 1
    P = packed["P"]

    # Gather + GMF product + lane packing (XLA fuses these into one fusion
    # producing the single packed activation the kernel consumes).
    ue_mlp = params["emb_user_mlp"][u].astype(compute_dtype)
    ie_mlp = params["emb_item_mlp"][i].astype(compute_dtype)
    mf = (params["emb_user_mf"][u] * params["emb_item_mf"][i]).astype(compute_dtype)

    B = u.shape[0]
    used = 2 * d_mlp + d_mf
    pad_lanes = P - used - 1
    x = jnp.concatenate(
        [ue_mlp, ie_mlp, mf,
         jnp.zeros((B, pad_lanes), compute_dtype),
         jnp.ones((B, 1), compute_dtype)],            # ones lane
        axis=-1)

    tb, B_pad = _choose_batch_tile(B, block_b)
    if B_pad != B:
        x = jnp.concatenate([x, jnp.zeros((B_pad - B, P), compute_dtype)], axis=0)
    num_blocks = B_pad // tb
    g = tb // 128

    # Explicit scoped-VMEM budget: covers double-buffered tiles + in-kernel f32
    # temporaries; >= 32 MiB (safe everywhere), <= 48 MiB (within v7x's 64 MiB).
    dsize = jnp.dtype(compute_dtype).itemsize
    wsize = jnp.dtype(packed["w_stack"].dtype).itemsize
    need = (2 * tb * P * dsize                      # packed acts, double-buffered
            + 2 * (n_fc * P * P * wsize + 8 * P * 4)  # weight stack + head
            + 2 * tb * 4                            # narrow output, double-buffered
            + 6 * tb * P * 4)                       # in-kernel f32 temporaries
    vmem_limit = int(min(max(need + (4 << 20), 32 << 20), 48 << 20))

    kernel = functools.partial(_ncf_kernel, n_fc)

    out = pl.pallas_call(
        kernel,
        out_shape=jax.ShapeDtypeStruct((num_blocks, g, 128), jnp.float32),
        grid_spec=pltpu.PrefetchScalarGridSpec(
            num_scalar_prefetch=0,
            grid=(num_blocks,),
            in_specs=[
                pl.BlockSpec((tb, P), lambda b: (b, 0)),          # packed acts
                pl.BlockSpec((n_fc, P, P), lambda b: (0, 0, 0)),  # all FC weights
                pl.BlockSpec((8, P), lambda b: (0, 0)),           # output head
            ],
            out_specs=pl.BlockSpec((1, g, 128), lambda b: (b, 0, 0)),
        ),
        compiler_params=pltpu.CompilerParams(
            dimension_semantics=("parallel",),
            vmem_limit_bytes=vmem_limit,
        ),
    )(x, packed["w_stack"], packed["wo"])

    return out.reshape(B_pad)[:B][:, None]


# -----------------------------------------------------------------------------
# Deterministic parameter init (weights stored pre-transposed as (in, out))
# -----------------------------------------------------------------------------
def init_params(key, layers, num_users, num_items, latent_dim_mf, latent_dim_mlp):
    params = {}
    keys = jax.random.split(key, 8 + 2 * (len(layers) - 1))
    kidx = 0

    def nxt():
        nonlocal kidx
        k = keys[kidx]
        kidx += 1
        return k

    params["emb_user_mlp"] = 0.1 * jax.random.normal(nxt(), (num_users, latent_dim_mlp), jnp.float32)
    params["emb_item_mlp"] = 0.1 * jax.random.normal(nxt(), (num_items, latent_dim_mlp), jnp.float32)
    params["emb_user_mf"] = 0.1 * jax.random.normal(nxt(), (num_users, latent_dim_mf), jnp.float32)
    params["emb_item_mf"] = 0.1 * jax.random.normal(nxt(), (num_items, latent_dim_mf), jnp.float32)

    for k, (in_size, out_size) in enumerate(zip(layers[:-1], layers[1:])):
        bound = 1.0 / (in_size ** 0.5)
        params[f"fc_w{k}"] = jax.random.uniform(nxt(), (in_size, out_size), jnp.float32, -bound, bound)
        params[f"fc_b{k}"] = jax.random.uniform(nxt(), (out_size,), jnp.float32, -bound, bound)

    # TODO(synk): original module calls nn.Linear() with no arguments (a bug);
    # implemented here as the intended Linear(layers[-1] + latent_dim_mf, 1).
    d_out_in = layers[-1] + latent_dim_mf
    bound = 1.0 / (d_out_in ** 0.5)
    params["out_w"] = jax.random.uniform(nxt(), (d_out_in, 1), jnp.float32, -bound, bound)
    params["out_b"] = jax.random.uniform(nxt(), (1,), jnp.float32, -bound, bound)
    return params


# -----------------------------------------------------------------------------
# Reference (pure JAX) for sanity check
# -----------------------------------------------------------------------------
def ncf_ref(u, i, params, layers, latent_dim_mf, latent_dim_mlp):
    ue_mlp = params["emb_user_mlp"][u]
    ie_mlp = params["emb_item_mlp"][i]
    ue_mf = params["emb_user_mf"][u]
    ie_mf = params["emb_item_mf"][i]
    mlp = jnp.concatenate([ue_mlp, ie_mlp], axis=-1)
    mf = ue_mf * ie_mf
    for k in range(len(layers) - 1):
        mlp = jnp.maximum(mlp @ params[f"fc_w{k}"] + params[f"fc_b{k}"], 0.0)
    vec = jnp.concatenate([mlp, mf], axis=-1)
    logits = vec @ params["out_w"] + params["out_b"]
    return jax.nn.sigmoid(logits)


if __name__ == "__main__":
    # Small, forward-consistent shapes (layers[0] must be 2 * latent_dim_mlp).
    num_users = 200
    num_items = 300
    latent_dim_mlp = 16
    latent_dim_mf = 8
    layers = [2 * latent_dim_mlp, 64, 32, 16]
    batch = 500          # not a multiple of the tile -> exercises pad + slice;
                         # tile chooser gives tb=256, grid=2 (both v7x TCs busy)

    key = jax.random.PRNGKey(0)
    kp, ku, ki = jax.random.split(key, 3)
    params = init_params(kp, layers, num_users, num_items, latent_dim_mf, latent_dim_mlp)

    u = jax.random.randint(ku, (batch,), 0, num_users, jnp.int32)
    i = jax.random.randint(ki, (batch,), 0, num_items, jnp.int32)

    y_ref = ncf_ref(u, i, params, layers, latent_dim_mf, latent_dim_mlp)

    # bfloat16 (default): MXU-native inputs, f32 accumulation / head / sigmoid.
    packed_bf16 = pack_ncf_params(params, layers, latent_dim_mf, latent_dim_mlp)
    y_bf16 = ncf_forward(u, i, params, packed_bf16, layers, latent_dim_mf, latent_dim_mlp)
    y_bf16 = jax.block_until_ready(y_bf16)
    assert y_bf16.shape == (batch, 1)
    assert jnp.allclose(y_bf16, y_ref, atol=5e-2, rtol=5e-2), "bf16 mismatch vs reference"

    # float32 run (reference-accurate) as a tight correctness check.
    packed_f32 = pack_ncf_params(params, layers, latent_dim_mf, latent_dim_mlp, jnp.float32)
    y_f32 = ncf_forward(u, i, params, packed_f32, layers, latent_dim_mf, latent_dim_mlp,
                        compute_dtype=jnp.float32)
    y_f32 = jax.block_until_ready(y_f32)
    assert y_f32.shape == (batch, 1)
    assert jnp.allclose(y_f32, y_ref, atol=2e-5, rtol=2e-5), "f32 mismatch vs reference"

    print("KERNEL_OK")
</pallas_src>

<mosaic_0001>
module attributes {stable_mosaic.version = 11 : i64} {
  func.func @_ncf_kernel(%arg0: i32, %arg1: memref<256x128xbf16, #tpu.memory_space<vmem>>, %arg2: memref<3x128x128xbf16, #tpu.memory_space<vmem>>, %arg3: memref<8x128xf32, #tpu.memory_space<vmem>>, %arg4: memref<1x2x128xf32, #tpu.memory_space<vmem>>) attributes {dimension_semantics = [#tpu.dimension_semantics<parallel>], iteration_bounds = array<i64: 2>, scalar_prefetch = 0 : i64, scratch_operands = 0 : i64, tpu.core_type = #tpu.core_type<tc>, window_params = [{transform_indices = @transform_0, window_bounds = array<i64: 256, 128>}, {pipeline_mode = #tpu.pipeline_mode<synchronous>, transform_indices = @transform_1, window_bounds = array<i64: 3, 128, 128>}, {pipeline_mode = #tpu.pipeline_mode<synchronous>, transform_indices = @transform_2, window_bounds = array<i64: 8, 128>}, {transform_indices = @transform_3, window_bounds = array<i64: 1, 2, 128>}]} {
    %c0 = arith.constant 0 : index
    %c0_0 = arith.constant 0 : index
    %0 = vector.load %arg1[%c0, %c0_0] : memref<256x128xbf16, #tpu.memory_space<vmem>>, vector<256x128xbf16>
    %c0_1 = arith.constant 0 : index
    %c0_2 = arith.constant 0 : index
    %c0_3 = arith.constant 0 : index
    %1 = vector.load %arg2[%c0_1, %c0_2, %c0_3] : memref<3x128x128xbf16, #tpu.memory_space<vmem>>, vector<1x128x128xbf16>
    %2 = vector.shape_cast %1 : vector<1x128x128xbf16> to vector<128x128xbf16>
    %cst = arith.constant dense<0.000000e+00> : vector<256x128xf32>
    %3 = tpu.matmul %0, %2, %cst {dimension_numbers = #tpu.dot_dimension_numbers<[1], [0], [0], [1], [0, 0, 1, 1], [], []>} : vector<256x128xbf16>, vector<128x128xbf16>, vector<256x128xf32> -> vector<256x128xf32>
    %cst_4 = arith.constant 0.000000e+00 : f32
    %4 = vector.broadcast %cst_4 : f32 to vector<256x128xf32>
    %5 = arith.maximumf %3, %4 : vector<256x128xf32>
    %6 = arith.truncf %5 : vector<256x128xf32> to vector<256x128xbf16>
    %c1 = arith.constant 1 : index
    %c0_5 = arith.constant 0 : index
    %c0_6 = arith.constant 0 : index
    %7 = vector.load %arg2[%c1, %c0_5, %c0_6] : memref<3x128x128xbf16, #tpu.memory_space<vmem>>, vector<1x128x128xbf16>
    %8 = vector.shape_cast %7 : vector<1x128x128xbf16> to vector<128x128xbf16>
    %cst_7 = arith.constant dense<0.000000e+00> : vector<256x128xf32>
    %9 = tpu.matmul %6, %8, %cst_7 {dimension_numbers = #tpu.dot_dimension_numbers<[1], [0], [0], [1], [0, 0, 1, 1], [], []>} : vector<256x128xbf16>, vector<128x128xbf16>, vector<256x128xf32> -> vector<256x128xf32>
    %cst_8 = arith.constant 0.000000e+00 : f32
    %10 = vector.broadcast %cst_8 : f32 to vector<256x128xf32>
    %11 = arith.maximumf %9, %10 : vector<256x128xf32>
    %12 = arith.truncf %11 : vector<256x128xf32> to vector<256x128xbf16>
    %c2 = arith.constant 2 : index
    %c0_9 = arith.constant 0 : index
    %c0_10 = arith.constant 0 : index
    %13 = vector.load %arg2[%c2, %c0_9, %c0_10] : memref<3x128x128xbf16, #tpu.memory_space<vmem>>, vector<1x128x128xbf16>
    %14 = vector.shape_cast %13 : vector<1x128x128xbf16> to vector<128x128xbf16>
    %cst_11 = arith.constant dense<0.000000e+00> : vector<256x128xf32>
    %15 = tpu.matmul %12, %14, %cst_11 {dimension_numbers = #tpu.dot_dimension_numbers<[1], [0], [0], [1], [0, 0, 1, 1], [], []>} : vector<256x128xbf16>, vector<128x128xbf16>, vector<256x128xf32> -> vector<256x128xf32>
    %cst_12 = arith.constant 0.000000e+00 : f32
    %16 = vector.broadcast %cst_12 : f32 to vector<256x128xf32>
    %17 = arith.maximumf %15, %16 : vector<256x128xf32>
    %18 = arith.truncf %17 : vector<256x128xf32> to vector<256x128xbf16>
    %c0_13 = arith.constant 0 : index
    %c0_14 = arith.constant 0 : index
    %19 = vector.load %arg3[%c0_13, %c0_14] : memref<8x128xf32, #tpu.memory_space<vmem>>, vector<8x128xf32>
    %20 = arith.extf %18 : vector<256x128xbf16> to vector<256x128xf32>
    %21 = vector.extract_strided_slice %19 {offsets = [0, 0], sizes = [1, 128], strides = [1, 1]} : vector<8x128xf32> to vector<1x128xf32>
    %22 = vector.broadcast %21 : vector<1x128xf32> to vector<256x128xf32>
    %23 = arith.mulf %20, %22 : vector<256x128xf32>
    %24 = arith.extf %0 : vector<256x128xbf16> to vector<256x128xf32>
    %25 = vector.extract_strided_slice %19 {offsets = [1, 0], sizes = [1, 128], strides = [1, 1]} : vector<8x128xf32> to vector<1x128xf32>
    %26 = vector.broadcast %25 : vector<1x128xf32> to vector<256x128xf32>
    %27 = arith.mulf %24, %26 : vector<256x128xf32>
    %28 = arith.addf %23, %27 : vector<256x128xf32>
    %29 = vector.shape_cast %28 : vector<256x128xf32> to vector<2x128x128xf32>
    %cst_15 = arith.constant dense<0.000000e+00> : vector<2x128xf32>
    %30 = vector.multi_reduction <add>, %29, %cst_15 [2] : vector<2x128x128xf32> to vector<2x128xf32>
    %31 = arith.negf %30 : vector<2x128xf32>
    %32 = math.exp %31 : vector<2x128xf32>
    %cst_16 = arith.constant 1.000000e+00 : f32
    %33 = vector.broadcast %cst_16 : f32 to vector<2x128xf32>
    %34 = arith.addf %33, %32 : vector<2x128xf32>
    %35 = arith.divf %33, %34 : vector<2x128xf32>
    %c0_17 = arith.constant 0 : index
    %c0_18 = arith.constant 0 : index
    %c0_19 = arith.constant 0 : index
    %36 = vector.load %arg4[%c0_17, %c0_18, %c0_19] : memref<1x2x128xf32, #tpu.memory_space<vmem>>, vector<1x2x128xf32>
    %37 = vector.shape_cast %36 : vector<1x2x128xf32> to vector<2x128xf32>
    %38 = vector.shape_cast %35 : vector<2x128xf32> to vector<1x2x128xf32>
    tpu.vector_store %arg4[%c0_17, %c0_18, %c0_19], %38 {strides = array<i32>} : memref<1x2x128xf32, #tpu.memory_space<vmem>>, vector<1x2x128xf32>,
    return
  }
  func.func @transform_0(%arg0: i32) -> (i32, i32) {
    %c0_i32 = arith.constant 0 : i32
    %c0_i32_0 = arith.constant 0 : i32
    return %arg0, %c0_i32 : i32, i32
  }
  func.func @transform_1(%arg0: i32) -> (i32, i32, i32) {
    %c0_i32 = arith.constant 0 : i32
    %c0_i32_0 = arith.constant 0 : i32
    %c0_i32_1 = arith.constant 0 : i32
    %c0_i32_2 = arith.constant 0 : i32
    return %c0_i32, %c0_i32_0, %c0_i32_1 : i32, i32, i32
  }
  func.func @transform_2(%arg0: i32) -> (i32, i32) {
    %c0_i32 = arith.constant 0 : i32
    %c0_i32_0 = arith.constant 0 : i32
    %c0_i32_1 = arith.constant 0 : i32
    return %c0_i32, %c0_i32_0 : i32, i32
  }
  func.func @transform_3(%arg0: i32) -> (i32, i32, i32) {
    %c0_i32 = arith.constant 0 : i32
    %c0_i32_0 = arith.constant 0 : i32
    %c0_i32_1 = arith.constant 0 : i32
    return %arg0, %c0_i32, %c0_i32_0 : i32, i32, i32
  }
}

</mosaic_0001>

<bundles_post_ra>
// kernel: tpu_custom_call.1
= control target key start
LH: loop header
LB: loop body
LE: loop exit
PB: predicated region body
PF: predicated region fallthrough
CT: control target
= control target key end

     0   :  { %8 = vsyncpa [#allocation3], 0  ;;  %s3876_s0 = inlined_call_operand.hbm [shape: bf16[512,128], index: 0, kind: input, shape index: {}]   ;;  %s3877_s1 = inlined_call_operand.hbm [shape: bf16[3,128,128], index: 1, kind: input, shape index: {}]   ;;  %s3878_s2 = inlined_call_operand.hbm [shape: f32[8,128], index: 2, kind: input, shape index: {}]   ;;  %s3879_s3 = inlined_call_operand.hbm [shape: f32[2,2,128], index: 3, kind: output, shape index: {}]  }
   0x1   :  { %10 = vsyncpa [#allocation3 + $0x1], 0 }
   0x2   :  { %11 = vsyncpa [#allocation6], 0 }
   0x3   :  { %12 = vsyncpa [#allocation4], 0 }
   0x4   :  { %14 = vsyncpa [#allocation4 + $0x1], 0  ;;  %s2699_s12 = smov 0   ;;  %s2701_s13 = smov 0  }
   0x5   :  { %s2703_s14 = smov 0   ;;  %s2705_s15 = smov 0  }
   0x6 LB: > { %s2720_s16 = sadd.s32 4294967295, %s2673_s15   ;;  %s2042_s17 = sadd.s32 4294967294, %s2673_s15   ;;  %s2673_s15 = sphi %s2705_s15, %s3991_s15   ;;  %s2669_s14 = sphi %s2703_s14, %s3990_s14   ;;  %s2665_s13 = sphi %s2701_s13, %s3989_s13   ;;  %s2661_s12 = sphi %s2699_s12, %s3988_s12  }
   0x7   : > { %p40_p0 = scmp.ne.s32.totalorder %s2665_s13, %s2661_s12  ;;  %p41_p1 = scmp.eq.s32.totalorder %s2720_s16, 0 }
   0x8   : > { %p106_p2 = scmp.eq.s32.totalorder %s2720_s16, 1  ;;  %p112_p3 = scmp.eq.s32.totalorder %s2042_s17, 1 }
   0x9   : > { %p2729_p4 = por %p41_p1, %p40_p0  ;;  %p2043_p5 = scmp.ge.s32.totalorder %s2673_s15, 1 }
   0xa   : > { %p2734_p6 = por %p112_p3, %p40_p0  ;;  %p119_p7 = scmp.lt.s32.totalorder %s2673_s15, 3 }
   0xb   : > { %s130_s22 = sshll.u32 %s3877_s1, 4  ;;  %s2675_s24 = smov [#allocation5]   ;;  %s131_s22 = int_to_ptr.hbm [resolvable:$true] %s130_s22 }
   0xc   : > { %p2742_p8 = pnand %p2043_p5, %p119_p7  ;;  %s132_s25 = sshll.u32 %s2675_s24, 4  ;;  %s133_s25 = int_to_ptr.vmem [resolvable:$true] %s132_s25 }
   0xd   : > { %s145_s28 = sshll.u32 %s3878_s2, 4  ;;  %s2676_s29 = smov 64   ;;  %s146_s28 = int_to_ptr.hbm [resolvable:$true] %s145_s28 }
   0xe   : > { %p2328_p9 = pneg %p2742_p8  ;;  %s2677_s30 = smov 4  }
   0xf   : > { %s2678_s4 = smov [#allocation7]   ;;  %s2758_s6 = sadd.s32 1, %s2673_s15  }
  0x10   : > { %p2329_p10 = pnand %p2328_p9, %p41_p1  ;;  %s147_s5 = sshll.u32 %s2678_s4, 4  ;;  %s148_s5 = int_to_ptr.vmem [resolvable:$true] %s147_s5 }
  0x11   : > { %s27_s7 = sadd.s32 1, %s2669_s14  ;;  %s24_s8 = ssub.s32 %s2673_s15, %s2758_s6 }
  0x12   : > { %2331 = dma.hbm_to_vmem [thread:$0]  (!%p2329_p10), %s131_s22, 3072, %s133_s25, [#allocation6], %s2676_s29, %s2676_s29, %s2677_s30  }
  0x13   : > { %2334 = dma.hbm_to_vmem [thread:$0]  (!%p2329_p10), %s146_s28, 128, %s148_s5, [#allocation6]  }
  0x14   : > { %p34_p12 = scmp.ne.s32.totalorder %s2669_s14, %s2665_s13  ;;  %p25_p13 = scmp.eq.s32.totalorder %s24_s8, 0 }
  0x15   : > { %p35_p0 = scmp.eq.s32.totalorder %s2673_s15, 0  ;;  %p2345_p5 = scmp.lt.s32.totalorder %s2673_s15, 2 }
  0x16   : > { %p2768_p3 = por %p106_p2, %p34_p12  ;;  %s158_s11 = sand.u32 1, %s2669_s14  }
  0x17   : > { %s2774_s10 = scalar_select %p25_p13, %s2669_s14, %s27_s7  }
  0x18   : > { %p36_p7 = por %p35_p0, %p34_p12  ;;  %s2047_s17 = sshll.u32 %s158_s11, 7 }
  0x19   : > { %s2251_s20 = sshll.u32 %s2673_s15, 7  ;;  %s162_s25 = scalar_lea.vmem [#allocation2], %s2047_s17 }
  0x1a   : > { %s167_s24 = scalar_lea.hbm %s3876_s0, %s2251_s20  ;;  %s170_s26 = sshll.u32 %s162_s25, 4  ;;  %s171_s26 = int_to_ptr.vmem [resolvable:$true] %s170_s26 }
  0x1b   : > { %s168_s27 = sshll.u32 %s167_s24, 4  ;;  %p2781_p2 = pnand %p2345_p5, %p36_p7  ;;  %s169_s27 = int_to_ptr.hbm [resolvable:$true] %s168_s27 }
  0x1c   : > { %s159_s4 = scalar_lea.sflag [#allocation3], %s158_s11  ;;  %s2573_s5 = sshra.s32 %s169_s27, 4  ;;  %s2574_s5 = int_to_ptr.hbm [resolvable:$true] %s2573_s5 }
  0x1d   : > { %s2575_s7 = scalar_lea.hbm %s2574_s5, 128  ;;  %p2577_p10 = pneg %p2781_p2 }
  0x1e   : > { %p2576_p9 = scmp.ne.s32.totalorder %s2574_s5, %s2575_s7  ;;  %s2580_s20 = scalar_lea.hbm %s3876_s0, 256 }
  0x1f   : > { %p2581_p0 = scmp.lt.s32.totalorder %s2574_s5, %s3876_s0  ;;  %p2582_p5 = scmp.lt.s32.totalorder %s2580_s20, %s2575_s7 }
  0x20   : > { %p2578_p12 = pnand %p2577_p10, %p2576_p9 }
  0x21   : > { %p2583_p7 = por %p2582_p5, %p2581_p0 }
  0x22   : > { %p2579_p13 = pneg %p2578_p12 }
  0x24   : > { %p2584_p11 = pnand %p2583_p7, %p2579_p13 }
  0x26   : > { %2587 = shalt.err (!%p2584_p11)
}
  0x27   : > { %2338 = dma.hbm_to_vmem [thread:$0]  (!%p2781_p2), %s169_s27, 2048, %s171_s26, %s159_s4, %s2676_s29, %s2676_s29, %s2677_s30  }
  0x28   : > { %182 = sbr.rel (%p2742_p8) target bundleno = 850 (0x352), region = 32  ;;  %s2801_s11 = sand.u32 (!%p2742_p8), 1, %s2665_s13  }
  0x29   : > { %s2051_s24 = sshll.u32 (!%p2742_p8), %s2801_s11, 7  ;;  %s185_s25 = scalar_lea.sflag (!%p2742_p8), [#allocation3], %s2801_s11 }
  0x2a   : > { %s2805_s5 = scalar_lea.vmem (!%p2742_p8), [#allocation2], %s2051_s24 }
  0x2d   : > { %2648 = dma.done.wait (%p2729_p4), %s185_s25, 2048  }
  0x2e   : > { %2650 = vsyncadd (%p2729_p4), %s185_s25, 4294965248 }
  0x2f   : > { %2652 = dma.done.wait (%p41_p1), [#allocation6], 3200  }
  0x30   : > { %2654 = vsyncadd (%p41_p1), [#allocation6], 4294964096  ;;  %v2275_v0 = vld [vmem:[#allocation5 + $0x38] sm:$0xff]  ;;  %v2274_v1 = vld [vmem:[#allocation5 + $0x30] sm:$0xff]  ;;  %vm1844_vm11 = vcmask 130112   ;;  %vm1848_vm13 = vcmask 195712  }
  0x31   : > { %415 = vmatpush.bf16.msra.mxu0 %v2275_v0  ;;  %2292 = vmatpush.bf16.msra.mxu3 %v2275_v0  ;;  %v2273_v2 = vld [vmem:[#allocation5 + $0x28] sm:$0xff]  ;;  %v2272_v3 = vld [vmem:[#allocation5 + $0x20] sm:$0xff]  ;;  %v2271_v4 = vld [vmem:[#allocation5 + $0x18] sm:$0xff]  ;;  %s2054_s18 = sshll.u32 %s2801_s11, 1  ;;  %s2248_s23 = sshll.u32 %s2720_s16, 1 }
  0x32   : > { %v2270_v5 = vld [vmem:[#allocation5 + $0x10] sm:$0xff]  ;;  %v2269_v6 = vld [vmem:[#allocation5 + $0x8] sm:$0xff]  ;;  %v2268_v7 = vld [vmem:[#allocation5] sm:$0xff]  ;;  %s1948_s30 = scalar_lea.hbm %s3879_s3, %s2248_s23  ;;  %s221_s26 = scalar_lea.vmem [#allocation8], %s2054_s18 }
  0x33   : > { %v2252_v8 = vld [vmem:[%s2805_s5] sm:$0xff]  ;;  %v2253_v10 = vld [vmem:[%s2805_s5 + $0x8] sm:$0xff]  ;;  %v2254_v12 = vld [vmem:[%s2805_s5 + $0x10] sm:$0xff]  ;;  %s1950_s27 = sshll.u32 %s221_s26, 4  ;;  %s1952_s28 = sshll.u32 %s1948_s30, 4  ;;  %s1951_s27 = int_to_ptr.vmem [resolvable:$true] %s1950_s27  ;;  %s1953_s28 = int_to_ptr.hbm [resolvable:$true] %s1952_s28 }
  0x34   : > { %v2264_v9 = vld [vmem:[%s2805_s5 + $0x60] sm:$0xff]  ;;  %v2265_v11 = vld [vmem:[%s2805_s5 + $0x68] sm:$0xff]  ;;  %v2266_v13 = vld [vmem:[%s2805_s5 + $0x70] sm:$0xff]  ;;  %s1938_s4 = scalar_lea.sflag [#allocation4], %s2801_s11  ;;  %s2617_s7 = sshra.s32 %s1953_s28, 4  ;;  %s2618_s7 = int_to_ptr.hbm [resolvable:$true] %s2617_s7 }
  0x35   : > { %416 = vmatpush.bf16.msra.mxu0 %v2274_v1  ;;  %2293 = vmatpush.bf16.msra.mxu3 %v2274_v1  ;;  %v2255_v14 = vld [vmem:[%s2805_s5 + $0x18] sm:$0xff]  ;;  %v2256_v15 = vld [vmem:[%s2805_s5 + $0x20] sm:$0xff]  ;;  %v2282_v17 = vld [vmem:[#allocation5 + $0x70] sm:$0xff]  ;;  %s2619_s8 = scalar_lea.hbm %s2618_s7, 2  ;;  %s2623_s21 = scalar_lea.hbm %s3879_s3, 4 }
  0x36   : > { %v2283_v16 = vld [vmem:[#allocation5 + $0x78] sm:$0xff]  ;;  %v2257_v18 = vld [vmem:[%s2805_s5 + $0x28] sm:$0xff]  ;;  %v2280_v20 = vld [vmem:[#allocation5 + $0x60] sm:$0xff]  ;;  %p2620_p1 = scmp.ne.s32.totalorder %s2618_s7, %s2619_s8  ;;  %p2624_p11 = scmp.lt.s32.totalorder %s2618_s7, %s3879_s3 }
  0x37   : > { %617 = vmatpush.bf16.msra.mxu1 %v2283_v16  ;;  %v2281_v19 = vld [vmem:[#allocation5 + $0x68] sm:$0xff]  ;;  %v2279_v21 = vld [vmem:[#allocation5 + $0x58] sm:$0xff]  ;;  %v2258_v22 = vld [vmem:[%s2805_s5 + $0x30] sm:$0xff]  ;;  %p2625_p2 = scmp.lt.s32.totalorder %s2623_s21, %s2619_s8 }
  0x38   : > { %v2278_v23 = vld [vmem:[#allocation5 + $0x50] sm:$0xff]  ;;  %v2277_v24 = vld [vmem:[#allocation5 + $0x48] sm:$0xff]  ;;  %v2276_v25 = vld [vmem:[#allocation5 + $0x40] sm:$0xff]  ;;  %p2621_p4 = pnand %p2620_p1, %p2768_p3 }
  0x39   : > { %417 = vmatpush.bf16.msra.mxu0 %v2273_v2  ;;  %2294 = vmatpush.bf16.msra.mxu3 %v2273_v2  ;;  %v2267_v26 = vld [vmem:[%s2805_s5 + $0x78] sm:$0xff]  ;;  %v2260_v28 = vld [vmem:[%s2805_s5 + $0x40] sm:$0xff]  ;;  %v2261_v37 = vld [vmem:[%s2805_s5 + $0x48] sm:$0xff]  ;;  %p2626_p9 = por %p2625_p2, %p2624_p11 }
  0x3a   : > { %v2259_v27 = vld [vmem:[%s2805_s5 + $0x38] sm:$0xff]  ;;  %v2262_v48 = vld [vmem:[%s2805_s5 + $0x50] sm:$0xff]  ;;  %p2622_p8 = pneg %p2621_p4 }
  0x3b   : > { %618 = vmatpush.bf16.msra.mxu1 %v2282_v17  ;;  %v2263_v59 = vld [vmem:[%s2805_s5 + $0x58] sm:$0xff] }
  0x3c   : > { %p2627_p10 = pnand %p2626_p9, %p2622_p8 }
  0x3d   : > { %418 = vmatpush.bf16.msra.mxu0 %v2272_v3  ;;  %2295 = vmatpush.bf16.msra.mxu3 %v2272_v3 }
  0x3f   : > { %619 = vmatpush.bf16.msra.mxu1 %v2281_v19 }
  0x41   : > { %419 = vmatpush.bf16.msra.mxu0 %v2271_v4  ;;  %2296 = vmatpush.bf16.msra.mxu3 %v2271_v4 }
  0x43   : > { %620 = vmatpush.bf16.msra.mxu1 %v2280_v20 }
  0x45   : > { %420 = vmatpush.bf16.msra.mxu0 %v2270_v5  ;;  %2297 = vmatpush.bf16.msra.mxu3 %v2270_v5 }
  0x47   : > { %621 = vmatpush.bf16.msra.mxu1 %v2279_v21 }
  0x49   : > { %421 = vmatpush.bf16.msra.mxu0 %v2269_v6  ;;  %2298 = vmatpush.bf16.msra.mxu3 %v2269_v6 }
  0x4b   : > { %622 = vmatpush.bf16.msra.mxu1 %v2278_v23 }
  0x4d   : > { %422 = vmatpush.bf16.msra.mxu0 %v2268_v7  ;;  %2299 = vmatpush.bf16.msra.mxu3 %v2268_v7 }
  0x4f   : > { %623 = vmatpush.bf16.msra.mxu1 %v2277_v24 }
  0x50   : > { %423 = vmatmul.bf16.vlgmr.msra.gmra.mxu0 %v2252_v8  ;;  %483 = vmatmul.bf16.vlgmr.msra.gmra.mxu3 %v2264_v9  ;;  %v2291_v9 = vld [vmem:[#allocation5 + $0xb8] sm:$0xff] }
  0x51   : > { %2300 = vmatpush.bf16.msrb.mxu3 %v2283_v16  ;;  %819 = vmatpush.bf16.msra.mxu2 %v2291_v9 }
  0x53   : > { %624 = vmatpush.bf16.msra.mxu1 %v2276_v25 }
  0x55   : > { %2301 = vmatpush.bf16.msrb.mxu3 %v2282_v17  ;;  %v2288_v17 = vld [vmem:[#allocation5 + $0xa0] sm:$0xff] }
  0x59   : > { %2302 = vmatpush.bf16.msrb.mxu3 %v2281_v19 }
  0x5d   : > { %2303 = vmatpush.bf16.msrb.mxu3 %v2280_v20 }
  0x60   : > { %428 = vmatmul.bf16.gmra.mxu0 %v2253_v10  ;;  %488 = vmatmul.bf16.gmra.mxu3 %v2265_v11 }
  0x61   : > { %2304 = vmatpush.bf16.msrb.mxu3 %v2279_v21 }
  0x65   : > { %2305 = vmatpush.bf16.msrb.mxu3 %v2278_v23 }
  0x69   : > { %2306 = vmatpush.bf16.msrb.mxu3 %v2277_v24  ;;  %v2285_v24 = vld [vmem:[#allocation5 + $0x88] sm:$0xff] }
  0x6d   : > { %2307 = vmatpush.bf16.msrb.mxu3 %v2276_v25 }
  0x70   : > { %433 = vmatmul.bf16.gmra.mxu0 %v2254_v12  ;;  %493 = vmatmul.bf16.gmra.mxu3 %v2266_v13  ;;  %v2290_v13 = vld [vmem:[#allocation5 + $0xb0] sm:$0xff] }
  0x71   : > { %2308 = vmatpush.bf16.msra.mxu3 %v2291_v9  ;;  %820 = vmatpush.bf16.msra.mxu2 %v2290_v13 }
  0x75   : > { %2309 = vmatpush.bf16.msra.mxu3 %v2290_v13 }
  0x80   : > { %438 = vmatmul.bf16.gmra.mxu0 %v2255_v14  ;;  %498 = vmatmul.bf16.gmra.mxu3 %v2267_v26 }
  0x90   : > { %443 = vmatmul.bf16.gmra.mxu0 %v2256_v15  ;;  %v2289_v15 = vld [vmem:[#allocation5 + $0xa8] sm:$0xff] }
  0x91   : > { %821 = vmatpush.bf16.msra.mxu2 %v2289_v15  ;;  %2310 = vmatpush.bf16.msra.mxu3 %v2289_v15 }
  0x95   : > { %822 = vmatpush.bf16.msra.mxu2 %v2288_v17  ;;  %2311 = vmatpush.bf16.msra.mxu3 %v2288_v17 }
  0xa0   : > { %448 = vmatmul.bf16.gmra.mxu0 %v2257_v18  ;;  %v2287_v18 = vld [vmem:[#allocation5 + $0x98] sm:$0xff] }
  0xa1   : > { %823 = vmatpush.bf16.msra.mxu2 %v2287_v18  ;;  %2312 = vmatpush.bf16.msra.mxu3 %v2287_v18 }
  0xb0   : > { %453 = vmatmul.bf16.gmra.mxu0 %v2258_v22  ;;  %v2286_v22 = vld [vmem:[#allocation5 + $0x90] sm:$0xff] }
  0xb1   : > { %824 = vmatpush.bf16.msra.mxu2 %v2286_v22  ;;  %2313 = vmatpush.bf16.msra.mxu3 %v2286_v22 }
  0xb5   : > { %825 = vmatpush.bf16.msra.mxu2 %v2285_v24  ;;  %2314 = vmatpush.bf16.msra.mxu3 %v2285_v24 }
  0xc0   : > { %458 = vmatmul.bf16.gmra.mxu0 %v2259_v27  ;;  %v2284_v27 = vld [vmem:[#allocation5 + $0x80] sm:$0xff] }
  0xc1   : > { %826 = vmatpush.bf16.msra.mxu2 %v2284_v27  ;;  %2315 = vmatpush.bf16.msra.mxu3 %v2284_v27 }
  0xcd   : > { %v424_v29 = vpop.f32.mrf.mxu0 }
  0xce   : > { %v504_v32 = vmax.f32 %v424_v29, 0.0 }
  0xd0   : > { %463 = vmatmul.bf16.gmra.mxu0 %v2260_v28 }
  0xd3   : > { %v484_v30 = vpop.f32.mrf.mxu3 }
  0xd4   : > { %v528_v35 = vmax.f32 %v484_v30, 0.0 }
  0xd5   : > { %v426_v31 = vpop.f32.mrf.mxu0 }
  0xd6   : > { %v505_v33 = vmax.f32 %v426_v31, 0.0 }
  0xd8   : > { %v536_v34 = vpack.c.bf16 %v505_v33, %v504_v32 }
  0xda   : > { %625 = vmatmul.bf16.vlgmr.msra.gmra.mxu1 %v536_v34 }
  0xdb   : > { %v486_v36 = vpop.f32.mrf.mxu3 }
  0xdc   : > { %v529_v38 = vmax.f32 %v486_v36, 0.0 }
  0xdd   : > { %v429_v39 = vpop.f32.mrf.mxu0 }
  0xde   : > { %v548_v40 = vpack.c.bf16 %v529_v38, %v528_v35  ;;  %v506_v43 = vmax.f32 %v429_v39, 0.0 }
  0xe0   : > { %468 = vmatmul.bf16.gmra.mxu0 %v2261_v37  ;;  %685 = vmatmul.bf16.vlgmr.msrb.gmra.mxu3 %v548_v40 }
  0xe3   : > { %v489_v41 = vpop.f32.mrf.mxu3 }
  0xe4   : > { %v530_v46 = vmax.f32 %v489_v41, 0.0 }
  0xe5   : > { %v431_v42 = vpop.f32.mrf.mxu0 }
  0xe6   : > { %v507_v44 = vmax.f32 %v431_v42, 0.0 }
  0xe8   : > { %v537_v45 = vpack.c.bf16 %v507_v44, %v506_v43 }
  0xea   : > { %630 = vmatmul.bf16.gmra.mxu1 %v537_v45 }
  0xeb   : > { %v491_v47 = vpop.f32.mrf.mxu3 }
  0xec   : > { %v531_v49 = vmax.f32 %v491_v47, 0.0 }
  0xed   : > { %v434_v50 = vpop.f32.mrf.mxu0 }
  0xee   : > { %v549_v51 = vpack.c.bf16 %v531_v49, %v530_v46  ;;  %v508_v54 = vmax.f32 %v434_v50, 0.0 }
  0xf0   : > { %473 = vmatmul.bf16.gmra.mxu0 %v2262_v48  ;;  %690 = vmatmul.bf16.gmra.mxu3 %v549_v51 }
  0xf3   : > { %v494_v52 = vpop.f32.mrf.mxu3 }
  0xf4   : > { %v532_v57 = vmax.f32 %v494_v52, 0.0 }
  0xf5   : > { %v436_v53 = vpop.f32.mrf.mxu0 }
  0xf6   : > { %v509_v55 = vmax.f32 %v436_v53, 0.0 }
  0xf8   : > { %v538_v56 = vpack.c.bf16 %v509_v55, %v508_v54 }
  0xfa   : > { %635 = vmatmul.bf16.gmra.mxu1 %v538_v56 }
  0xfb   : > { %v496_v58 = vpop.f32.mrf.mxu3 }
  0xfc   : > { %v533_v60 = vmax.f32 %v496_v58, 0.0 }
  0xfd   : > { %v439_v61 = vpop.f32.mrf.mxu0 }
  0xfe   : > { %v550_v62 = vpack.c.bf16 %v533_v60, %v532_v57  ;;  %v510_v0 = vmax.f32 %v439_v61, 0.0 }
 0x100   : > { %478 = vmatmul.bf16.gmra.mxu0 %v2263_v59  ;;  %695 = vmatmul.bf16.gmra.mxu3 %v550_v62 }
 0x103   : > { %v499_v26 = vpop.f32.mrf.mxu3 }
 0x104   : > { %v534_v31 = vmax.f32 %v499_v26, 0.0 }
 0x105   : > { %v441_v63 = vpop.f32.mrf.mxu0 }
 0x106   : > { %v511_v1 = vmax.f32 %v441_v63, 0.0 }
 0x108   : > { %v539_v2 = vpack.c.bf16 %v511_v1, %v510_v0 }
 0x10a   : > { %640 = vmatmul.bf16.gmra.mxu1 %v539_v2 }
 0x10b   : > { %v501_v32 = vpop.f32.mrf.mxu3 }
 0x10c   : > { %v535_v34 = vmax.f32 %v501_v32, 0.0 }
 0x10d   : > { %v444_v3 = vpop.f32.mrf.mxu0 }
 0x10e   : > { %v512_v5 = vmax.f32 %v444_v3, 0.0  ;;  %v551_v35 = vpack.c.bf16 %v535_v34, %v534_v31 }
 0x110   : > { %700 = vmatmul.bf16.gmra.mxu3 %v551_v35 }
 0x115   : > { %v446_v4 = vpop.f32.mrf.mxu0 }
 0x116   : > { %v513_v6 = vmax.f32 %v446_v4, 0.0 }
 0x118   : > { %v540_v7 = vpack.c.bf16 %v513_v6, %v512_v5 }
 0x11a   : > { %645 = vmatmul.bf16.gmra.mxu1 %v540_v7 }
 0x11d   : > { %v449_v8 = vpop.f32.mrf.mxu0 }
 0x11e   : > { %v514_v11 = vmax.f32 %v449_v8, 0.0 }
 0x125   : > { %v451_v10 = vpop.f32.mrf.mxu0 }
 0x126   : > { %v515_v12 = vmax.f32 %v451_v10, 0.0 }
 0x128   : > { %v541_v14 = vpack.c.bf16 %v515_v12, %v514_v11 }
 0x12a   : > { %650 = vmatmul.bf16.gmra.mxu1 %v541_v14 }
 0x12d   : > { %v454_v16 = vpop.f32.mrf.mxu0 }
 0x12e   : > { %v516_v20 = vmax.f32 %v454_v16, 0.0 }
 0x135   : > { %v456_v19 = vpop.f32.mrf.mxu0 }
 0x136   : > { %v517_v21 = vmax.f32 %v456_v19, 0.0 }
 0x138   : > { %v542_v23 = vpack.c.bf16 %v517_v21, %v516_v20 }
 0x13a   : > { %655 = vmatmul.bf16.gmra.mxu1 %v542_v23 }
 0x13d   : > { %v459_v25 = vpop.f32.mrf.mxu0 }
 0x13e   : > { %v518_v29 = vmax.f32 %v459_v25, 0.0 }
 0x145   : > { %v461_v28 = vpop.f32.mrf.mxu0 }
 0x146   : > { %v519_v30 = vmax.f32 %v461_v28, 0.0 }
 0x148   : > { %v543_v33 = vpack.c.bf16 %v519_v30, %v518_v29 }
 0x14a   : > { %660 = vmatmul.bf16.gmra.mxu1 %v543_v33 }
 0x14d   : > { %v464_v36 = vpop.f32.mrf.mxu0 }
 0x14e   : > { %v520_v38 = vmax.f32 %v464_v36, 0.0 }
 0x155   : > { %v466_v37 = vpop.f32.mrf.mxu0 }
 0x156   : > { %v521_v39 = vmax.f32 %v466_v37, 0.0 }
 0x157   : > { %v626_v40 = vpop.f32.mrf.mxu1 }
 0x158   : > { %v544_v41 = vpack.c.bf16 %v521_v39, %v520_v38  ;;  %v706_v44 = vmax.f32 %v626_v40, 0.0 }
 0x15a   : > { %665 = vmatmul.bf16.gmra.mxu1 %v544_v41 }
 0x15d   : > { %v469_v42 = vpop.f32.mrf.mxu0 }
 0x15e   : > { %v522_v49 = vmax.f32 %v469_v42, 0.0 }
 0x15f   : > { %v628_v43 = vpop.f32.mrf.mxu1 }
 0x160   : > { %v707_v45 = vmax.f32 %v628_v43, 0.0 }
 0x162   : > { %v738_v46 = vpack.c.bf16 %v707_v45, %v706_v44 }
 0x163   : > { %v686_v47 = vpop.f32.mrf.mxu3 }
 0x164   : > { %827 = vmatmul.bf16.vlgmr.msra.gmra.mxu2 %v738_v46  ;;  %v730_v53 = vmax.f32 %v686_v47, 0.0 }
 0x165   : > { %v471_v48 = vpop.f32.mrf.mxu0 }
 0x166   : > { %v523_v50 = vmax.f32 %v471_v48, 0.0 }
 0x167   : > { %v631_v51 = vpop.f32.mrf.mxu1 }
 0x168   : > { %v545_v52 = vpack.c.bf16 %v523_v50, %v522_v49  ;;  %v708_v59 = vmax.f32 %v631_v51, 0.0 }
 0x16a   : > { %670 = vmatmul.bf16.gmra.mxu1 %v545_v52 }
 0x16b   : > { %v688_v54 = vpop.f32.mrf.mxu3 }
 0x16c   : > { %v731_v55 = vmax.f32 %v688_v54, 0.0 }
 0x16d   : > { %v474_v56 = vpop.f32.mrf.mxu0 }
 0x16e   : > { %v750_v57 = vpack.c.bf16 %v731_v55, %v730_v53  ;;  %v524_v0 = vmax.f32 %v474_v56, 0.0 }
 0x16f   : > { %v633_v58 = vpop.f32.mrf.mxu1 }
 0x170   : > { %v709_v60 = vmax.f32 %v633_v58, 0.0  ;;  %887 = vmatmul.bf16.vlgmr.msra.gmra.mxu3 %v750_v57  ;;  %v223_v57 = vld [vmem:[%s2805_s5] sm:$0xff]  }
 0x171   : > { %v972_v58 = vld [vmem:[#allocation7] sm:$0xff] }
 0x172   : > { %v739_v61 = vpack.c.bf16 %v709_v60, %v708_v59 }
 0x173   : > { %v691_v62 = vpop.f32.mrf.mxu3 }
 0x174   : > { %832 = vmatmul.bf16.gmra.mxu2 %v739_v61  ;;  %v732_v4 = vmax.f32 %v691_v62, 0.0  ;;  %v1038_v62 = vunpack.c.l.bf16 %v223_v57 }
 0x175   : > { %v476_v63 = vpop.f32.mrf.mxu0 }
 0x176   : > { %v525_v1 = vmax.f32 %v476_v63, 0.0  ;;  %v2832_v63 = vperm.slane %v972_v58, 1 }
 0x177   : > { %v636_v2 = vpop.f32.mrf.mxu1 }
 0x178   : > { %v546_v3 = vpack.c.bf16 %v525_v1, %v524_v0  ;;  %v710_v10 = vmax.f32 %v636_v2, 0.0  ;;  %v2834_v1 = vperm.slane %v972_v58, 0 }
 0x17a   : > { %675 = vmatmul.bf16.gmra.mxu1 %v546_v3  ;;  %v1071_v3 = vmul.f32 %v2832_v63, %v1038_v62 }
 0x17b   : > { %v693_v5 = vpop.f32.mrf.mxu3 }
 0x17c   : > { %v733_v6 = vmax.f32 %v693_v5, 0.0 }
 0x17d   : > { %v479_v7 = vpop.f32.mrf.mxu0 }
 0x17e   : > { %v751_v8 = vpack.c.bf16 %v733_v6, %v732_v4  ;;  %v526_v15 = vmax.f32 %v479_v7, 0.0  ;;  %v1039_v7 = vunpack.c.h.bf16 %v223_v57  ;;  %v227_v57 = vld [vmem:[%s2805_s5 + $0x10] sm:$0xff]  }
 0x17f   : > { %v638_v9 = vpop.f32.mrf.mxu1 }
 0x180   : > { %v711_v11 = vmax.f32 %v638_v9, 0.0  ;;  %892 = vmatmul.bf16.gmra.mxu3 %v751_v8 }
 0x182   : > { %v740_v12 = vpack.c.bf16 %v711_v11, %v710_v10 }
 0x183   : > { %v696_v13 = vpop.f32.mrf.mxu3 }
 0x184   : > { %837 = vmatmul.bf16.gmra.mxu2 %v740_v12  ;;  %v734_v19 = vmax.f32 %v696_v13, 0.0  ;;  %v247_v12 = vld [vmem:[%s2805_s5 + $0x60] sm:$0xff]  }
 0x185   : > { %v481_v14 = vpop.f32.mrf.mxu0 }
 0x186   : > { %v527_v16 = vmax.f32 %v481_v14, 0.0 }
 0x187   : > { %v641_v17 = vpop.f32.mrf.mxu1 }
 0x188   : > { %v547_v18 = vpack.c.bf16 %v527_v16, %v526_v15  ;;  %v712_v24 = vmax.f32 %v641_v17, 0.0  ;;  %v1072_v17 = vmul.f32 %v2832_v63, %v1039_v7 }
 0x18a   : > { %680 = vmatmul.bf16.gmra.mxu1 %v547_v18 }
 0x18b   : > { %v698_v20 = vpop.f32.mrf.mxu3 }
 0x18c   : > { %v735_v21 = vmax.f32 %v698_v20, 0.0  ;;  %v1062_v20 = vunpack.c.l.bf16 %v247_v12 }
 0x18e   : > { %v752_v22 = vpack.c.bf16 %v735_v21, %v734_v19  ;;  %v225_v19 = vld [vmem:[%s2805_s5 + $0x8] sm:$0xff]  }
 0x18f   : > { %v643_v23 = vpop.f32.mrf.mxu1 }
 0x190   : > { %v713_v25 = vmax.f32 %v643_v23, 0.0  ;;  %897 = vmatmul.bf16.gmra.mxu3 %v752_v22 }
 0x192   : > { %v741_v26 = vpack.c.bf16 %v713_v25, %v712_v24  ;;  %v1040_v25 = vunpack.c.l.bf16 %v225_v19 }
 0x193   : > { %v701_v47 = vpop.f32.mrf.mxu3 }
 0x194   : > { %842 = vmatmul.bf16.gmra.mxu2 %v741_v26  ;;  %v736_v50 = vmax.f32 %v701_v47, 0.0 }
 0x197   : > { %v646_v27 = vpop.f32.mrf.mxu1 }
 0x198   : > { %v714_v29 = vmax.f32 %v646_v27, 0.0 }
 0x19b   : > { %v703_v49 = vpop.f32.mrf.mxu3 }
 0x19c   : > { %v737_v51 = vmax.f32 %v703_v49, 0.0 }
 0x19e   : > { %v753_v56 = vpack.c.bf16 %v737_v51, %v736_v50 }
 0x19f   : > { %v648_v28 = vpop.f32.mrf.mxu1 }
 0x1a0   : > { %v715_v30 = vmax.f32 %v648_v28, 0.0  ;;  %902 = vmatmul.bf16.gmra.mxu3 %v753_v56 }
 0x1a2   : > { %v742_v31 = vpack.c.bf16 %v715_v30, %v714_v29  ;;  %v1095_v29 = vmul.f32 %v2832_v63, %v1062_v20  ;;  %v1043_v20 = vunpack.c.h.bf16 %v227_v57 }
 0x1a4   : > { %847 = vmatmul.bf16.gmra.mxu2 %v742_v31 }
 0x1a7   : > { %v651_v32 = vpop.f32.mrf.mxu1 }
 0x1a8   : > { %v716_v34 = vmax.f32 %v651_v32, 0.0 }
 0x1af   : > { %v653_v33 = vpop.f32.mrf.mxu1 }
 0x1b0   : > { %v717_v35 = vmax.f32 %v653_v33, 0.0 }
 0x1b2   : > { %v743_v36 = vpack.c.bf16 %v717_v35, %v716_v34  ;;  %v1073_v34 = vmul.f32 %v2832_v63, %v1040_v25 }
 0x1b4   : > { %852 = vmatmul.bf16.gmra.mxu2 %v743_v36 }
 0x1b7   : > { %v656_v37 = vpop.f32.mrf.mxu1 }
 0x1b8   : > { %v718_v39 = vmax.f32 %v656_v37, 0.0 }
 0x1bf   : > { %v658_v38 = vpop.f32.mrf.mxu1 }
 0x1c0   : > { %v719_v40 = vmax.f32 %v658_v38, 0.0 }
 0x1c2   : > { %v744_v41 = vpack.c.bf16 %v719_v40, %v718_v39  ;;  %v1063_v39 = vunpack.c.h.bf16 %v247_v12 }
 0x1c4   : > { %857 = vmatmul.bf16.gmra.mxu2 %v744_v41  ;;  %v1096_v51 = vmul.f32 %v2832_v63, %v1063_v39 }
 0x1c7   : > { %v661_v42 = vpop.f32.mrf.mxu1 }
 0x1c8   : > { %v720_v44 = vmax.f32 %v661_v42, 0.0 }
 0x1cf   : > { %v663_v43 = vpop.f32.mrf.mxu1 }
 0x1d0   : > { %v721_v45 = vmax.f32 %v663_v43, 0.0  ;;  %v1041_v43 = vunpack.c.h.bf16 %v225_v19 }
 0x1d2   : > { %v745_v46 = vpack.c.bf16 %v721_v45, %v720_v44 }
 0x1d4   : > { %862 = vmatmul.bf16.gmra.mxu2 %v745_v46 }
 0x1d7   : > { %v666_v48 = vpop.f32.mrf.mxu1 }
 0x1d8   : > { %v722_v53 = vmax.f32 %v666_v48, 0.0 }
 0x1df   : > { %v668_v52 = vpop.f32.mrf.mxu1 }
 0x1e0   : > { %v723_v54 = vmax.f32 %v668_v52, 0.0 }
 0x1e2   : > { %v746_v55 = vpack.c.bf16 %v723_v54, %v722_v53  ;;  %v249_v53 = vld [vmem:[%s2805_s5 + $0x68] sm:$0xff]  }
 0x1e4   : > { %867 = vmatmul.bf16.gmra.mxu2 %v746_v55  ;;  %v1074_v55 = vmul.f32 %v2832_v63, %v1041_v43 }
 0x1e7   : > { %v671_v59 = vpop.f32.mrf.mxu1  ;;  %v828_v60 = vpop.f32.mrf.mxu2 }
 0x1e8   : > { %v908_v61 = vmax.f32 %v828_v60, 0.0  ;;  %v724_v8 = vmax.f32 %v671_v59, 0.0 }
 0x1ea   : > { %v940_v0 = vpack.c.bf16 %v908_v61, %v908_v61  ;;  %v1064_v61 = vunpack.c.l.bf16 %v249_v53 }
 0x1ec   : > { %v973_v2 = vunpack.c.l.bf16 %v940_v0 }
 0x1ee   : > { %v1006_v4 = vmul.f32 %v2834_v1, %v973_v2 }
 0x1ef   : > { %v673_v5 = vpop.f32.mrf.mxu1  ;;  %v830_v6 = vpop.f32.mrf.mxu2 }
 0x1f0   : > { %v725_v9 = vmax.f32 %v673_v5, 0.0  ;;  %v909_v10 = vmax.f32 %v830_v6, 0.0  ;;  %v1103_v11 = vadd.f32 %v1071_v3, %v1006_v4  ;;  %v1042_v5 = vunpack.c.l.bf16 %v227_v57 }
 0x1f2   : > { %v941_v13 = vpack.c.bf16 %v909_v10, %v909_v10  ;;  %1135 = vadd.xlane.f32.xlu0 %v1103_v11  ;;  %v747_v14 = vpack.c.bf16 %v725_v9, %v724_v8  ;;  %v1097_v8 = vmul.f32 %v2832_v63, %v1064_v61  ;;  %v1075_v11 = vmul.f32 %v2832_v63, %v1042_v5 }
 0x1f3   : > { %v888_v15 = vpop.f32.mrf.mxu3 }
 0x1f4   : > { %v974_v16 = vunpack.c.l.bf16 %v941_v13  ;;  %872 = vmatmul.bf16.gmra.mxu2 %v747_v14  ;;  %v932_v18 = vmax.f32 %v888_v15, 0.0  ;;  %v1065_v13 = vunpack.c.h.bf16 %v249_v53 }
 0x1f6   : > { %v1007_v21 = vmul.f32 %v2834_v1, %v974_v16  ;;  %v964_v22 = vpack.c.bf16 %v932_v18, %v932_v18  ;;  %v1098_v25 = vmul.f32 %v2832_v63, %v1065_v13  ;;  %v233_v13 = vld [vmem:[%s2805_s5 + $0x28] sm:$0xff]  }
 0x1f7   : > { %v676_v23 = vpop.f32.mrf.mxu1  ;;  %v833_v24 = vpop.f32.mrf.mxu2 }
 0x1f8   : > { %v910_v26 = vmax.f32 %v833_v24, 0.0  ;;  %v1104_v27 = vadd.f32 %v1072_v17, %v1007_v21  ;;  %v997_v28 = vunpack.c.l.bf16 %v964_v22  ;;  %v726_v40 = vmax.f32 %v676_v23, 0.0 }
 0x1fa   : > { %v942_v30 = vpack.c.bf16 %v910_v26, %v910_v26  ;;  %1137 = vadd.xlane.f32.xlu0 %v1104_v27  ;;  %v1030_v31 = vmul.f32 %v2834_v1, %v997_v28 }
 0x1fb   : > { %v890_v32 = vpop.f32.mrf.mxu3 }
 0x1fc   : > { %v975_v33 = vunpack.c.l.bf16 %v942_v30  ;;  %v933_v35 = vmax.f32 %v890_v32, 0.0  ;;  %v1127_v36 = vadd.f32 %v1095_v29, %v1030_v31  ;;  %v251_v30 = vld [vmem:[%s2805_s5 + $0x70] sm:$0xf]  ;;  %v1076_v32 = vmul.f32 %v2832_v63, %v1043_v20 }
 0x1fe   : > { %v1008_v37 = vmul.f32 %v2834_v1, %v975_v33  ;;  %v965_v38 = vpack.c.bf16 %v933_v35, %v933_v35  ;;  %1183 = vadd.xlane.f32.xlu2 %v1127_v36 }
 0x1ff   : > { %v678_v41 = vpop.f32.mrf.mxu1  ;;  %v835_v42 = vpop.f32.mrf.mxu2 }
 0x200   : > { %v727_v44 = vmax.f32 %v678_v41, 0.0  ;;  %v911_v45 = vmax.f32 %v835_v42, 0.0  ;;  %v1105_v46 = vadd.f32 %v1073_v34, %v1008_v37  ;;  %v998_v47 = vunpack.c.l.bf16 %v965_v38  ;;  %v229_v34 = vld [vmem:[%s2805_s5 + $0x18] sm:$0xff]  }
 0x201   : > { %v1066_v38 = vunpack.c.l.bf16 %v251_v30  ;;  %v1044_v43 = vunpack.c.l.bf16 %v229_v34  ;;  %v235_v30 = vld [vmem:[%s2805_s5 + $0x30] sm:$0xf] }
 0x202   : > { %v943_v48 = vpack.c.bf16 %v911_v45, %v911_v45  ;;  %1139 = vadd.xlane.f32.xlu1 %v1105_v46  ;;  %v748_v49 = vpack.c.bf16 %v727_v44, %v726_v40  ;;  %v1031_v50 = vmul.f32 %v2834_v1, %v998_v47 }
 0x203   : > { %v893_v52 = vpop.f32.mrf.mxu3  ;;  %v1099_v46 = vmul.f32 %v2832_v63, %v1066_v38 }
 0x204   : > { %v976_v54 = vunpack.c.l.bf16 %v943_v48  ;;  %877 = vmatmul.bf16.gmra.mxu2 %v748_v49  ;;  %v934_v56 = vmax.f32 %v893_v52, 0.0  ;;  %v1128_v60 = vadd.f32 %v1096_v51, %v1031_v50  ;;  %v1077_v48 = vmul.f32 %v2832_v63, %v1044_v43 }
 0x206   : > { %v1009_v58 = vmul.f32 %v2834_v1, %v976_v54  ;;  %v966_v59 = vpack.c.bf16 %v934_v56, %v934_v56  ;;  %v1045_v54 = vunpack.c.h.bf16 %v229_v34 }
 0x207   : > { %v681_v62 = vpop.f32.mrf.mxu1  ;;  %v838_v0 = vpop.f32.mrf.mxu2 }
 0x208   : > { %v912_v2 = vmax.f32 %v838_v0, 0.0  ;;  %v1106_v3 = vadd.f32 %v1074_v55, %v1009_v58  ;;  %v999_v4 = vunpack.c.l.bf16 %v966_v59  ;;  %v728_v17 = vmax.f32 %v681_v62, 0.0  ;;  %v231_v58 = vld [vmem:[%s2805_s5 + $0x20] sm:$0xff]  }
 0x209   : > { %v1078_v57 = vmul.f32 %v2832_v63, %v1045_v54  ;;  %v1046_v0 = vunpack.c.l.bf16 %v231_v58 }
 0x20a   : > { %v944_v6 = vpack.c.bf16 %v912_v2, %v912_v2  ;;  %1141 = vadd.xlane.f32.xlu0 %v1106_v3  ;;  %1185 = vadd.xlane.f32.xlu1 %v1128_v60  ;;  %v1032_v7 = vmul.f32 %v2834_v1, %v999_v4 }
 0x20b   : > { %v895_v9 = vpop.f32.mrf.mxu3  ;;  %v1079_v4 = vmul.f32 %v2832_v63, %v1046_v0 }
 0x20c   : > { %v977_v10 = vunpack.c.l.bf16 %v944_v6  ;;  %v935_v12 = vmax.f32 %v895_v9, 0.0  ;;  %v1129_v16 = vadd.f32 %v1097_v8, %v1032_v7  ;;  %v1047_v9 = vunpack.c.h.bf16 %v231_v58 }
 0x20e   : > { %v1010_v14 = vmul.f32 %v2834_v1, %v977_v10  ;;  %v967_v15 = vpack.c.bf16 %v935_v12, %v935_v12  ;;  %v1080_v12 = vmul.f32 %v2832_v63, %v1047_v9 }
 0x20f   : > { %v683_v18 = vpop.f32.mrf.mxu1  ;;  %v840_v19 = vpop.f32.mrf.mxu2 }
 0x210   : > { %v729_v21 = vmax.f32 %v683_v18, 0.0  ;;  %v913_v22 = vmax.f32 %v840_v19, 0.0  ;;  %v1107_v23 = vadd.f32 %v1075_v11, %v1010_v14  ;;  %v1000_v24 = vunpack.c.l.bf16 %v967_v15 }
 0x211   : > { %v1048_v18 = vunpack.c.l.bf16 %v233_v13 }
 0x212   : > { %v945_v26 = vpack.c.bf16 %v913_v22, %v913_v22  ;;  %1143 = vadd.xlane.f32.xlu2 %v1107_v23  ;;  %v749_v27 = vpack.c.bf16 %v729_v21, %v728_v17  ;;  %1187 = vadd.xlane.f32.xlu0 %v1129_v16  ;;  %v1033_v28 = vmul.f32 %v2834_v1, %v1000_v24 }
 0x213   : > { %v898_v29 = vpop.f32.mrf.mxu3  ;;  %v1081_v21 = vmul.f32 %v2832_v63, %v1048_v18 }
 0x214   : > { %v978_v31 = vunpack.c.l.bf16 %v945_v26  ;;  %882 = vmatmul.bf16.gmra.mxu2 %v749_v27  ;;  %v936_v33 = vmax.f32 %v898_v29, 0.0  ;;  %v1130_v37 = vadd.f32 %v1098_v25, %v1033_v28  ;;  %v1049_v26 = vunpack.c.h.bf16 %v233_v13 }
 0x216   : > { %v1011_v35 = vmul.f32 %v2834_v1, %v978_v31  ;;  %v968_v36 = vpack.c.bf16 %v936_v33, %v936_v33  ;;  %v1082_v29 = vmul.f32 %v2832_v63, %v1049_v26 }
 0x217   : > { %v843_v39 = vpop.f32.mrf.mxu2 }
 0x218   : > { %v914_v40 = vmax.f32 %v843_v39, 0.0  ;;  %v1108_v41 = vadd.f32 %v1076_v32, %v1011_v35  ;;  %v1001_v42 = vunpack.c.l.bf16 %v968_v36  ;;  %v1050_v35 = vunpack.c.l.bf16 %v235_v30 }
 0x21a   : > { %v946_v44 = vpack.c.bf16 %v914_v40, %v914_v40  ;;  %1145 = vadd.xlane.f32.xlu1 %v1108_v41  ;;  %1189 = vadd.xlane.f32.xlu2 %v1130_v37  ;;  %v1034_v45 = vmul.f32 %v2834_v1, %v1001_v42  ;;  %v1083_v38 = vmul.f32 %v2832_v63, %v1050_v35 }
 0x21c   : > { %v979_v47 = vunpack.c.l.bf16 %v946_v44  ;;  %v1131_v50 = vadd.f32 %v1099_v46, %v1034_v45  ;;  %v239_v45 = vld [vmem:[%s2805_s5 + $0x40] sm:$0xff]  }
 0x21e   : > { %v1012_v49 = vmul.f32 %v2834_v1, %v979_v47 }
 0x21f   : > { %v845_v51 = vpop.f32.mrf.mxu2 }
 0x220   : > { %v915_v52 = vmax.f32 %v845_v51, 0.0  ;;  %v1109_v53 = vadd.f32 %v1077_v48, %v1012_v49  ;;  %v1054_v49 = vunpack.c.l.bf16 %v239_v45 }
 0x222   : > { %v947_v55 = vpack.c.bf16 %v915_v52, %v915_v52  ;;  %1147 = vadd.xlane.f32.xlu0 %v1109_v53  ;;  %1191 = vadd.xlane.f32.xlu1 %v1131_v50  ;;  %v1087_v52 = vmul.f32 %v2832_v63, %v1054_v49 }
 0x224   : > { %v980_v56 = vunpack.c.l.bf16 %v947_v55 }
 0x226   : > { %v1013_v59 = vmul.f32 %v2834_v1, %v980_v56 }
 0x227   : > { %v848_v60 = vpop.f32.mrf.mxu2 }
 0x228   : > { %v916_v61 = vmax.f32 %v848_v60, 0.0  ;;  %v1110_v62 = vadd.f32 %v1078_v57, %v1013_v59 }
 0x22a   : > { %v948_v2 = vpack.c.bf16 %v916_v61, %v916_v61  ;;  %1149 = vadd.xlane.f32.xlu2 %v1110_v62  ;;  %v1055_v62 = vunpack.c.h.bf16 %v239_v45 }
 0x22c   : > { %v981_v3 = vunpack.c.l.bf16 %v948_v2 }
 0x22e   : > { %v1014_v5 = vmul.f32 %v2834_v1, %v981_v3 }
 0x22f   : > { %v850_v6 = vpop.f32.mrf.mxu2 }
 0x230   : > { %v917_v7 = vmax.f32 %v850_v6, 0.0  ;;  %v1111_v8 = vadd.f32 %v1079_v4, %v1014_v5  ;;  %v1088_v6 = vmul.f32 %v2832_v63, %v1055_v62 }
 0x232   : > { %v949_v10 = vpack.c.bf16 %v917_v7, %v917_v7  ;;  %1151 = vadd.xlane.f32.xlu1 %v1111_v8 }
 0x234   : > { %v982_v11 = vunpack.c.l.bf16 %v949_v10 }
 0x236   : > { %v1015_v14 = vmul.f32 %v2834_v1, %v982_v11  ;;  %v241_v11 = vld [vmem:[%s2805_s5 + $0x48] sm:$0xff]  }
 0x237   : > { %v853_v15 = vpop.f32.mrf.mxu2  ;;  %v1057_v26 = vunpack.c.h.bf16 %v241_v11 }
 0x238   : > { %v918_v16 = vmax.f32 %v853_v15, 0.0  ;;  %v1112_v17 = vadd.f32 %v1080_v12, %v1015_v14 }
 0x23a   : > { %v950_v19 = vpack.c.bf16 %v918_v16, %v918_v16  ;;  %1153 = vadd.xlane.f32.xlu0 %v1112_v17  ;;  %v1056_v16 = vunpack.c.l.bf16 %v241_v11 }
 0x23c   : > { %v983_v20 = vunpack.c.l.bf16 %v950_v19 }
 0x23e   : > { %v1016_v22 = vmul.f32 %v2834_v1, %v983_v20 }
 0x23f   : > { %v855_v23 = vpop.f32.mrf.mxu2 }
 0x240   : > { %v919_v24 = vmax.f32 %v855_v23, 0.0  ;;  %v1113_v25 = vadd.f32 %v1081_v21, %v1016_v22 }
 0x242   : > { %v951_v27 = vpack.c.bf16 %v919_v24, %v919_v24  ;;  %1155 = vadd.xlane.f32.xlu2 %v1113_v25  ;;  %v1089_v24 = vmul.f32 %v2832_v63, %v1056_v16  ;;  %v1839_v25 = vlaneseq }
 0x244   : > { %v984_v28 = vunpack.c.l.bf16 %v951_v27 }
 0x246   : > { %v1017_v31 = vmul.f32 %v2834_v1, %v984_v28 }
 0x247   : > { %v858_v32 = vpop.f32.mrf.mxu2 }
 0x248   : > { %v920_v33 = vmax.f32 %v858_v32, 0.0  ;;  %v1114_v34 = vadd.f32 %v1082_v29, %v1017_v31  ;;  %v2906_v32 = vand.u32 127, %v1839_v25 }
 0x24a   : > { %v952_v36 = vpack.c.bf16 %v920_v33, %v920_v33  ;;  %1157 = vadd.xlane.f32.xlu1 %v1114_v34  ;;  %v1090_v34 = vmul.f32 %v2832_v63, %v1057_v26 }
 0x24c   : > { %v985_v37 = vunpack.c.l.bf16 %v952_v36 }
 0x24e   : > { %v1018_v39 = vmul.f32 %v2834_v1, %v985_v37 }
 0x24f   : > { %v2881_v40 = vpop.f32.mrf.mxu2 }
 0x250   : > { %v1115_v41 = vadd.f32 %v1083_v38, %v1018_v39 }
 0x252   : > { %1159 = vadd.xlane.f32.xlu0 %v1115_v41 }
 0x257   : > { %v2883_v42 = vpop.f32.mrf.mxu2 }
 0x25f   : > { %v2885_v43 = vpop.f32.mrf.mxu2 }
 0x265   : > { %v1136_v44 = vpop.xlane.xlu0 %1135 }
 0x266   : > { %v2215_v46 = vmul.f32 -1.442695, %v1136_v44 }
 0x267   : > { %v868_v47 = vpop.f32.mrf.mxu2 }
 0x268   : > { %2385 = vpow2.f32 %v2215_v46  ;;  %v924_v48 = vmax.f32 %v868_v47, 0.0  ;;  %v2913_v46 = vadd.s32 4294967288, %v2906_v32 }
 0x26a   : > { %v956_v50 = vpack.c.bf16 %v924_v48, %v924_v48 }
 0x26c   : > { %v989_v51 = vunpack.c.l.bf16 %v956_v50 }
 0x26d   : > { %v1138_v53 = vpop.xlane.xlu0 %1137 }
 0x26e   : > { %v2386_v54 = vpop.eup %2385  ;;  %v2216_v55 = vmul.f32 -1.442695, %v1138_v53  ;;  %v1022_v56 = vmul.f32 %v2834_v1, %v989_v51 }
 0x26f   : > { %v2890_v57 = vadd.f32 1.0, %v2386_v54  ;;  %v870_v58 = vpop.f32.mrf.mxu2 }
 0x270   : > { %2387 = vpow2.f32 %v2216_v55  ;;  %v925_v59 = vmax.f32 %v870_v58, 0.0  ;;  %v1119_v60 = vadd.f32 %v1087_v52, %v1022_v56 }
 0x271   : > { %2389 = vrcp.f32 %v2890_v57  ;;  %v1338_v35 = vand.u32 2147483648, %v2890_v57  ;;  %vm1332_vm4 = vweird.f32 %v2890_v57  ;;  %v1336_v49 = vand.u32 2147483647, %v2890_v57 }
 0x272   : > { %v957_v61 = vpack.c.bf16 %v925_v59, %v925_v59  ;;  %1167 = vadd.xlane.f32.xlu1 %v1119_v60  ;;  %v900_v60 = vpop.f32.mrf.mxu3 }
 0x273   : > { %v1339_v53 = vor.u32 1.1754944e-38, %v1338_v35  ;;  %vm1337_vm8 = vcmp.eq.f32.partialorder %v1336_v49, 8.507059e+37  ;;  %v245_v49 = vld [vmem:[%s2805_s5 + $0x58] sm:$0xff]  }
 0x274   : > { %v990_v0 = vunpack.c.l.bf16 %v957_v61 }
 0x275   : > { %v1140_v2 = vpop.xlane.xlu1 %1139 }
 0x276   : > { %v2388_v3 = vpop.eup %2387  ;;  %v2217_v4 = vmul.f32 -1.442695, %v1140_v2  ;;  %v1023_v5 = vmul.f32 %v2834_v1, %v990_v0  ;;  %v2938_v2 = vadd.s32 4294967280, %v2906_v32 }
 0x277   : > { %v1296_v7 = vadd.f32 1.0, %v2388_v3  ;;  %v873_v8 = vpop.f32.mrf.mxu2  ;;  %v2895_v9 = vpop.eup %2389  ;;  %v243_v3 = vld [vmem:[%s2805_s5 + $0x50] sm:$0xff]  }
 0x278   : > { %2391 = vpow2.f32 %v2217_v4  ;;  %v926_v10 = vmax.f32 %v873_v8, 0.0  ;;  %v1120_v13 = vadd.f32 %v1088_v6, %v1023_v5  ;;  %v1328_v14 = vmul.f32 %v2895_v9, %v2890_v57 }
 0x279   : > { %2393 = vrcp.f32 %v1296_v7  ;;  %vm1333_vm1 = vweird.f32 %v2895_v9  ;;  %v1353_v37 = vand.u32 2147483648, %v1296_v7  ;;  %vm1347_vm2 = vweird.f32 %v1296_v7 }
 0x27a   : > { %v958_v12 = vpack.c.bf16 %v926_v10, %v926_v10  ;;  %1169 = vadd.xlane.f32.xlu2 %v1120_v13  ;;  %v1329_v19 = vsub.f32 1.0, %v1328_v14  ;;  %v1351_v41 = vand.u32 2147483647, %v1296_v7  ;;  %vm2928_vm5 = vmor %vm1332_vm4, %vm1333_vm1 }
 0x27b   : > { %v1354_v54 = vor.u32 1.1754944e-38, %v1353_v37 }
 0x27c   : > { %v991_v15 = vunpack.c.l.bf16 %v958_v12  ;;  %v1330_v28 = vmul.f32 %v2895_v9, %v1329_v19  ;;  %vm1352_vm6 = vcmp.eq.f32.partialorder %v1351_v41, 8.507059e+37  ;;  %v1058_v12 = vunpack.c.l.bf16 %v243_v3 }
 0x27e   : > { %v2392_v17 = vpop.eup %2391  ;;  %v1024_v23 = vmul.f32 %v2834_v1, %v991_v15  ;;  %v1331_v39 = vadd.f32 %v2895_v9, %v1330_v28  ;;  %v921_v28 = vmax.f32 %v2881_v40, 0.0 }
 0x27f   : > { %v2394_v18 = vpop.eup %2393  ;;  %v2900_v20 = vadd.f32 1.0, %v2392_v17  ;;  %v875_v21 = vpop.f32.mrf.mxu2 }
 0x280   : > { %v1343_v22 = vmul.f32 %v2394_v18, %v1296_v7  ;;  %v927_v29 = vmax.f32 %v875_v21, 0.0  ;;  %v1121_v31 = vadd.f32 %v1089_v24, %v1024_v23  ;;  %vm1348_vm0 = vweird.f32 %v2394_v18 }
 0x281   : > { %2395 = vrcp.f32 %v2900_v20  ;;  %vm2916_vm3 = vmor %vm1347_vm2, %vm1348_vm0  ;;  %v1335_v57 = vsel %vm2928_vm5, %v2895_v9, %v1331_v39  ;;  %v1368_v58 = vand.u32 2147483648, %v2900_v20  ;;  %v1366_v0 = vand.u32 2147483647, %v2900_v20  ;;  %v236_v39 = vld [vmem:[%s2805_s5 + $0x34] sm:$0xff]  }
 0x282   : > { %v1344_v27 = vsub.f32 1.0, %v1343_v22  ;;  %v959_v33 = vpack.c.bf16 %v927_v29, %v927_v29  ;;  %1171 = vadd.xlane.f32.xlu2 %v1121_v31  ;;  %v1340_v4 = vsel %vm1337_vm8, %v1339_v53, %v1335_v57  ;;  %vm1362_vm9 = vweird.f32 %v2900_v20  ;;  %v252_v22 = vld [vmem:[%s2805_s5 + $0x74] sm:$0xff]  }
 0x283   : > { %v937_v7 = vmax.f32 %v900_v60, 0.0  ;;  %v1369_v9 = vor.u32 1.1754944e-38, %v1368_v58  ;;  %vm1367_vm12 = vcmp.eq.f32.partialorder %v1366_v0, 8.507059e+37  ;;  %v1841_v13 = vperm.slane %v1340_v4, %v2906_v32 }
 0x284   : > { %v1345_v30 = vmul.f32 %v2394_v18, %v1344_v27  ;;  %v992_v44 = vunpack.c.l.bf16 %v959_v33  ;;  %v1091_v21 = vmul.f32 %v2832_v63, %v1058_v12  ;;  %v1067_v27 = vunpack.c.l.bf16 %v252_v22 }
 0x285   : > { %v969_v19 = vpack.c.bf16 %v937_v7, %v937_v7  ;;  %v953_v35 = vpack.c.bf16 %v921_v28, %v921_v28  ;;  %v1052_v4 = vunpack.c.h.bf16 %v236_v39  ;;  %vm1852_vm5 = vcmask 261312  }
 0x286   : > { %v1346_v36 = vadd.f32 %v2394_v18, %v1345_v30  ;;  %v1025_v51 = vmul.f32 %v2834_v1, %v992_v44  ;;  %v1059_v30 = vunpack.c.h.bf16 %v243_v3 }
 0x287   : > { %v2396_v38 = vpop.eup %2395  ;;  %v878_v45 = vpop.f32.mrf.mxu2  ;;  %v1002_v25 = vunpack.c.l.bf16 %v969_v19  ;;  %v986_v44 = vunpack.c.l.bf16 %v953_v35 }
 0x288   : > { %v1358_v48 = vmul.f32 %v2396_v38, %v2900_v20  ;;  %v1350_v50 = vsel %vm2916_vm3, %v2394_v18, %v1346_v36  ;;  %v928_v56 = vmax.f32 %v878_v45, 0.0  ;;  %v1122_v59 = vadd.f32 %v1090_v34, %v1025_v51  ;;  %v903_v45 = vpop.f32.mrf.mxu3  ;;  %v1186_v35 = vpop.xlane.xlu1 %1185 }
 0x289   : > { %v1355_v61 = vsel %vm1352_vm6, %v1354_v54, %v1350_v50  ;;  %vm1363_vm7 = vweird.f32 %v2396_v38  ;;  %v1035_v33 = vmul.f32 %v2834_v1, %v1002_v25  ;;  %v1100_v34 = vmul.f32 %v2832_v63, %v1067_v27  ;;  %v238_v27 = vld [vmem:[%s2805_s5 + $0x3c] sm:$0xf] }
 0x28a   : > { %v1359_v55 = vsub.f32 1.0, %v1358_v48  ;;  %1173 = vadd.xlane.f32.xlu1 %v1122_v59  ;;  %v960_v6 = vpack.c.bf16 %v928_v56, %v928_v56  ;;  %v1843_v8 = vperm.slane %v1355_v61, %v2913_v46  ;;  %vm1364_vm10 = vmor %vm1362_vm9, %vm1363_vm7  ;;  %v1051_v48 = vunpack.c.l.bf16 %v236_v39 }
 0x28b   : > { %v1132_v41 = vadd.f32 %v1100_v34, %v1035_v33  ;;  %v922_v50 = vmax.f32 %v2883_v42, 0.0  ;;  %v1060_v51 = vunpack.c.l.bf16 %v245_v49  ;;  %v1019_v53 = vmul.f32 %v2834_v1, %v986_v44 }
 0x28c   : > { %v1360_v62 = vmul.f32 %v2396_v38, %v1359_v55  ;;  %v993_v16 = vunpack.c.l.bf16 %v960_v6  ;;  %v1845_v18 = vsel %vm1844_vm11, %v1843_v8, %v1841_v13  ;;  %v1084_v54 = vmul.f32 %v2832_v63, %v1051_v48 }
 0x28d   : > { %v954_v56 = vpack.c.bf16 %v922_v50, %v922_v50  ;;  %v938_v57 = vmax.f32 %v903_v45, 0.0  ;;  %v1093_v58 = vmul.f32 %v2832_v63, %v1060_v51  ;;  %v1068_v13 = vunpack.c.h.bf16 %v252_v22 }
 0x28e   : > { %v1361_v5 = vadd.f32 %v2396_v38, %v1360_v62  ;;  %v1026_v24 = vmul.f32 %v2834_v1, %v993_v16  ;;  %v1116_v59 = vadd.f32 %v1084_v54, %v1019_v53  ;;  %v1053_v34 = vunpack.c.l.bf16 %v238_v27 }
 0x28f   : > { %v880_v10 = vpop.f32.mrf.mxu2  ;;  %v987_v0 = vunpack.c.l.bf16 %v954_v56  ;;  %v970_v3 = vpack.c.bf16 %v938_v57, %v938_v57 }
 0x290   : > { %v1365_v11 = vsel %vm1364_vm10, %v2396_v38, %v1361_v5  ;;  %v929_v17 = vmax.f32 %v880_v10, 0.0  ;;  %v1123_v26 = vadd.f32 %v1091_v21, %v1026_v24  ;;  %v1092_v38 = vmul.f32 %v2832_v63, %v1059_v30  ;;  %v905_v62 = vpop.f32.mrf.mxu3  ;;  %v1146_v50 = vpop.xlane.xlu1 %1145 }
 0x291   : > { %v1370_v14 = vsel %vm1367_vm12, %v1369_v9, %v1365_v11  ;;  %v939_v5 = vmax.f32 %v905_v62, 0.0  ;;  %v1003_v7 = vunpack.c.l.bf16 %v970_v3  ;;  %v1020_v8 = vmul.f32 %v2834_v1, %v987_v0 }
 0x292   : > { %v1847_v15 = vperm.slane %v1370_v14, %v2938_v2  ;;  %v961_v23 = vpack.c.bf16 %v929_v17, %v929_v17  ;;  %1175 = vadd.xlane.f32.xlu0 %v1123_v26  ;;  %v1085_v9 = vmul.f32 %v2832_v63, %v1052_v4  ;;  %v923_v10 = vmax.f32 %v2885_v43, 0.0  ;;  %v1184_v14 = vpop.xlane.xlu2 %1183  ;;  %v1142_v26 = vpop.xlane.xlu0 %1141 }
 0x293   : > { %v971_v11 = vpack.c.bf16 %v939_v5, %v939_v5  ;;  %v2239_v16 = vmul.f32 -1.442695, %v1184_v14  ;;  %v1036_v17 = vmul.f32 %v2834_v1, %v1003_v7  ;;  %v1101_v21 = vmul.f32 %v2832_v63, %v1068_v13 }
 0x294   : > { %v2947_v20 = vsel %vm1848_vm13, %v1847_v15, %v1845_v18  ;;  %v994_v29 = vunpack.c.l.bf16 %v961_v23  ;;  %v1061_v15 = vunpack.c.h.bf16 %v245_v49  ;;  %v1117_v18 = vadd.f32 %v1085_v9, %v1020_v8  ;;  %v254_v23 = vld [vmem:[%s2805_s5 + $0x7c] sm:$0xf] }
 0x295   : > { %v955_v19 = vpack.c.bf16 %v923_v10, %v923_v10  ;;  %v1004_v24 = vunpack.c.l.bf16 %v971_v11  ;;  %2397 = vpow2.f32 %v2239_v16  ;;  %v1133_v22 = vadd.f32 %v1101_v21, %v1036_v17 }
 0x296   : > { %v1027_v37 = vmul.f32 %v2834_v1, %v994_v29  ;;  %v1094_v43 = vmul.f32 %v2832_v63, %v1061_v15  ;;  %v1069_v28 = vunpack.c.l.bf16 %v254_v23  ;;  %v2218_v30 = vmul.f32 -1.442695, %v1142_v26 }
 0x297   : > { %v883_v31 = vpop.f32.mrf.mxu2  ;;  %v988_v29 = vunpack.c.l.bf16 %v955_v19  ;;  %v3012_v21 = vadd.s32 4294967272, %v2906_v32 }
 0x298   : > { %v930_v36 = vmax.f32 %v883_v31, 0.0  ;;  %v1124_v47 = vadd.f32 %v1092_v38, %v1027_v37  ;;  %v1037_v31 = vmul.f32 %v2834_v1, %v1004_v24  ;;  %2399 = vpow2.f32 %v2218_v30  ;;  %v1192_v3 = vpop.xlane.xlu1 %1191 }
 0x299   : > { %v1021_v39 = vmul.f32 %v2834_v1, %v988_v29  ;;  %v3028_v29 = vadd.s32 4294967264, %v2906_v32 }
 0x29a   : > { %v962_v40 = vpack.c.bf16 %v930_v36, %v930_v36  ;;  %1193 = vadd.xlane.f32.xlu0 %v1132_v41  ;;  %1177 = vadd.xlane.f32.xlu2 %v1124_v47  ;;  %v1102_v36 = vmul.f32 %v2832_v63, %v1069_v28  ;;  %v1086_v41 = vmul.f32 %v2832_v63, %v1053_v34  ;;  %v1144_v44 = vpop.xlane.xlu2 %1143  ;;  %v1188_v53 = vpop.xlane.xlu0 %1187  ;;  %v3025_v28 = vadd.s32 4294967224, %v2906_v32 }
 0x29b   : > { %v2398_v37 = vpop.eup %2397  ;;  %v2219_v48 = vmul.f32 -1.442695, %v1144_v44  ;;  %v2241_v57 = vmul.f32 -1.442695, %v1188_v53  ;;  %v2243_v44 = vmul.f32 -1.442695, %v1192_v3 }
 0x29c   : > { %v995_v52 = vunpack.c.l.bf16 %v962_v40  ;;  %v1134_v38 = vadd.f32 %v1102_v36, %v1037_v31  ;;  %v1319_v45 = vadd.f32 1.0, %v2398_v37  ;;  %v2240_v40 = vmul.f32 -1.442695, %v1186_v35 }
 0x29d   : > { %v1118_v47 = vadd.f32 %v1086_v41, %v1021_v39  ;;  %v3042_v36 = vadd.s32 4294967256, %v2906_v32 }
 0x29e   : > { %v1028_v60 = vmul.f32 %v2834_v1, %v995_v52  ;;  %v2400_v49 = vpop.eup %2399  ;;  %2401 = vrcp.f32 %v1319_v45  ;;  %v2220_v52 = vmul.f32 -1.442695, %v1146_v50  ;;  %vm1692_vm14 = vweird.f32 %v1319_v45 }
 0x29f   : > { %v885_v55 = vpop.f32.mrf.mxu2  ;;  %2403 = vpow2.f32 %v2240_v40  ;;  %v2977_v51 = vadd.f32 1.0, %v2400_v49  ;;  %v1696_v10 = vand.u32 2147483647, %v1319_v45  ;;  %v1698_v11 = vand.u32 2147483648, %v1319_v45 }
 0x2a0   : > { %v931_v61 = vmax.f32 %v885_v55, 0.0  ;;  %v1125_v42 = vadd.f32 %v1093_v58, %v1028_v60  ;;  %2405 = vpow2.f32 %v2219_v48 }
 0x2a1   : > { %2407 = vrcp.f32 %v2977_v51  ;;  %vm3016_vm1 = vcmp.eq.f32.partialorder %v1696_v10, 8.507059e+37  ;;  %vm1377_vm2 = vweird.f32 %v2977_v51 }
 0x2a2   : > { %1161 = vadd.xlane.f32.xlu2 %v1116_v59  ;;  %v963_v6 = vpack.c.bf16 %v931_v61, %v931_v61  ;;  %1179 = vadd.xlane.f32.xlu1 %v1125_v42  ;;  %2409 = vpow2.f32 %v2220_v52  ;;  %v1190_v55 = vpop.xlane.xlu2 %1189  ;;  %v1148_v42 = vpop.xlane.xlu0 %1147  ;;  %v3058_v52 = vadd.s32 4294967216, %v2906_v32 }
 0x2a3   : > { %v2242_v61 = vmul.f32 -1.442695, %v1190_v55  ;;  %2411 = vpow2.f32 %v2241_v57  ;;  %v2221_v7 = vmul.f32 -1.442695, %v1148_v42 }
 0x2a4   : > { %v996_v12 = vunpack.c.l.bf16 %v963_v6  ;;  %v2979_v54 = vpop.eup %2401 }
 0x2a5   : > { %v2404_v63 = vpop.eup %2403  ;;  %v1688_v56 = vmul.f32 %v2979_v54, %v1319_v45  ;;  %vm1693_vm15 = vweird.f32 %v2979_v54  ;;  %v1152_v27 = vpop.xlane.xlu1 %1151 }
 0x2a6   : > { %v1029_v25 = vmul.f32 %v2834_v1, %v996_v12  ;;  %v2406_v1 = vpop.eup %2405  ;;  %v2983_v58 = vadd.f32 1.0, %v2404_v63  ;;  %vm3007_vm0 = vmor %vm1692_vm14, %vm1693_vm15  ;;  %v2223_v37 = vmul.f32 -1.442695, %v1152_v27 }
 0x2a7   : > { %v2985_v59 = vadd.f32 1.0, %v2406_v1  ;;  %v2987_v60 = vpop.eup %2407  ;;  %v1689_v0 = vsub.f32 1.0, %v1688_v56 }
 0x2a8   : > { %v1126_v33 = vadd.f32 %v1094_v43, %v1029_v25  ;;  %v2410_v62 = vpop.eup %2409  ;;  %2413 = vrcp.f32 %v2983_v58  ;;  %v1373_v4 = vmul.f32 %v2987_v60, %v2977_v51  ;;  %v1699_v25 = vor.u32 1.1754944e-38, %v1698_v11 }
 0x2a9   : > { %2415 = vrcp.f32 %v2985_v59  ;;  %v2993_v5 = vadd.f32 1.0, %v2410_v62  ;;  %v1690_v6 = vmul.f32 %v2979_v54, %v1689_v0  ;;  %v2412_v9 = vpop.eup %2411  ;;  %vm1378_vm3 = vweird.f32 %v2987_v60 }
 0x2aa   : > { %1163 = vadd.xlane.f32.xlu1 %v1117_v18  ;;  %1195 = vadd.xlane.f32.xlu2 %v1133_v22  ;;  %2417 = vpow2.f32 %v2242_v61  ;;  %v1150_v8 = vpop.xlane.xlu2 %1149  ;;  %v1374_v12 = vsub.f32 1.0, %v1373_v4  ;;  %v3004_v18 = vadd.s32 4294967232, %v2906_v32  ;;  %v3014_v23 = vadd.f32 1.0, %v2412_v9  ;;  %vm3063_vm6 = vmor %vm1377_vm2, %vm1378_vm3 }
 0x2ab   : > { %1181 = vadd.xlane.f32.xlu0 %v1126_v33  ;;  %2419 = vrcp.f32 %v2993_v5  ;;  %v1691_v15 = vadd.f32 %v2979_v54, %v1690_v6  ;;  %v2222_v16 = vmul.f32 -1.442695, %v1150_v8  ;;  %v1381_v22 = vand.u32 2147483647, %v2977_v51 }
 0x2ac   : > { %2421 = vpow2.f32 %v2221_v7  ;;  %v1375_v43 = vmul.f32 %v2987_v60, %v1374_v12  ;;  %v1383_v33 = vand.u32 2147483648, %v2977_v51  ;;  %v1713_v50 = vand.u32 2147483648, %v2983_v58 }
 0x2ad   : > { %v1695_v31 = vsel %vm3007_vm0, %v2979_v54, %v1691_v15  ;;  %2423 = vpow2.f32 %v2222_v16  ;;  %vm3051_vm4 = vcmp.eq.f32.partialorder %v1381_v22, 8.507059e+37  ;;  %v1396_v54 = vand.u32 2147483647, %v2985_v59  ;;  %v1154_v55 = vpop.xlane.xlu0 %1153 }
 0x2ae   : > { %v2997_v13 = vpop.eup %2413  ;;  %2425 = vrcp.f32 %v3014_v23  ;;  %v1376_v39 = vadd.f32 %v2987_v60, %v1375_v43  ;;  %v3049_v45 = vsel %vm3016_vm1, %v1699_v25, %v1695_v31  ;;  %v1384_v49 = vor.u32 1.1754944e-38, %v1383_v33 }
 0x2af   : > { %v3000_v14 = vpop.eup %2415  ;;  %v1703_v26 = vmul.f32 %v2997_v13, %v2983_v58  ;;  %v1917_v57 = vperm.slane %v3049_v45, %v3004_v18  ;;  %vm1707_vm7 = vweird.f32 %v2983_v58  ;;  %v1398_v42 = vand.u32 2147483648, %v2985_v59 }
 0x2b0   : > { %v2418_v17 = vpop.eup %2417  ;;  %v1388_v30 = vmul.f32 %v3000_v14, %v2985_v59  ;;  %v1380_v51 = vsel %vm3063_vm6, %v2987_v60, %v1376_v39  ;;  %vm1708_vm9 = vweird.f32 %v2997_v13  ;;  %v1714_v6 = vor.u32 1.1754944e-38, %v1713_v50 }
 0x2b1   : > { %v3036_v34 = vadd.f32 1.0, %v2418_v17  ;;  %v3038_v35 = vpop.eup %2419  ;;  %v1704_v41 = vsub.f32 1.0, %v1703_v26  ;;  %vm1392_vm10 = vweird.f32 %v2985_v59  ;;  %v2224_v60 = vmul.f32 -1.442695, %v1154_v55  ;;  %vm3110_vm14 = vmor %vm1707_vm7, %vm1708_vm9 }
 0x2b2   : > { %1197 = vadd.xlane.f32.xlu1 %v1134_v38  ;;  %v2422_v38 = vpop.eup %2421  ;;  %v1389_v48 = vsub.f32 1.0, %v1388_v30  ;;  %v1403_v63 = vmul.f32 %v3038_v35, %v2993_v5  ;;  %v1385_v8 = vsel %vm3051_vm4, %v1384_v49, %v1380_v51  ;;  %vm3091_vm12 = vcmp.eq.f32.partialorder %v1396_v54, 8.507059e+37 }
 0x2b3   : > { %1165 = vadd.xlane.f32.xlu0 %v1118_v47  ;;  %v1711_v47 = vand.u32 2147483647, %v2983_v58  ;;  %2427 = vrcp.f32 %v3036_v34  ;;  %v3070_v1 = vadd.f32 1.0, %v2422_v38  ;;  %v2424_v56 = vpop.eup %2423  ;;  %v1705_v61 = vmul.f32 %v2997_v13, %v1704_v41 }
 0x2b4   : > { %2429 = vpow2.f32 %v2223_v37  ;;  %v3078_v62 = vpop.eup %2425  ;;  %v1390_v3 = vmul.f32 %v3000_v14, %v1389_v48  ;;  %v1404_v10 = vsub.f32 1.0, %v1403_v63  ;;  %v3096_v11 = vadd.f32 1.0, %v2424_v56 }
 0x2b5   : > { %2431 = vpow2.f32 %v2243_v44  ;;  %vm3081_vm8 = vcmp.eq.f32.partialorder %v1711_v47, 8.507059e+37  ;;  %v1156_v4 = vpop.xlane.xlu2 %1155  ;;  %v1706_v15 = vadd.f32 %v2997_v13, %v1705_v61  ;;  %v1718_v16 = vmul.f32 %v3078_v62, %v3014_v23 }
 0x2b6   : > { %2433 = vrcp.f32 %v3070_v1  ;;  %v3104_v17 = vadd.s32 4294967208, %v2906_v32  ;;  %v2225_v19 = vmul.f32 -1.442695, %v1156_v4  ;;  %v1391_v43 = vadd.f32 %v3000_v14, %v1390_v3 }
 0x2b7   : > { %vm1393_vm15 = vweird.f32 %v3000_v14  ;;  %v1399_v26 = vor.u32 1.1754944e-38, %v1398_v42  ;;  %v1851_v30 = vperm.slane %v1385_v8, %v3012_v21  ;;  %v1411_v31 = vand.u32 2147483647, %v2993_v5 }
 0x2b8   : > { %v1413_v33 = vand.u32 2147483648, %v2993_v5  ;;  %2435 = vpow2.f32 %v2224_v60  ;;  %v1405_v58 = vmul.f32 %v3038_v35, %v1404_v10  ;;  %vm1407_vm0 = vweird.f32 %v2993_v5  ;;  %vm3130_vm2 = vmor %vm1392_vm10, %vm1393_vm15 }
 0x2b9   : > { %v3098_v12 = vpop.eup %2427  ;;  %v3122_v37 = vadd.s32 4294967248, %v2906_v32  ;;  %2437 = vrcp.f32 %v3096_v11  ;;  %v1710_v38 = vsel %vm3110_vm14, %v2997_v13, %v1706_v15  ;;  %vm1856_vm1 = vcmask 326912  }
 0x2ba   : > { %v2430_v24 = vpop.eup %2429  ;;  %v1719_v41 = vsub.f32 1.0, %v1718_v16  ;;  %2439 = vpow2.f32 %v2225_v19  ;;  %v1395_v47 = vsel %vm3130_vm2, %v3000_v14, %v1391_v43  ;;  %v1733_v13 = vmul.f32 %v3098_v12, %v3036_v34 }
 0x2bb   : > { %v2432_v22 = vpop.eup %2431  ;;  %v3134_v44 = vadd.f32 1.0, %v2430_v24  ;;  %v1853_v59 = vsel %vm1852_vm5, %v1851_v30, %v2947_v20  ;;  %vm3147_vm3 = vcmp.eq.f32.partialorder %v1411_v31, 8.507059e+37  ;;  %v1414_v50 = vor.u32 1.1754944e-38, %v1413_v33 }
 0x2bc   : > { %v3136_v40 = vpop.eup %2433  ;;  %v3143_v48 = vadd.f32 1.0, %v2432_v22  ;;  %v1726_v53 = vand.u32 2147483647, %v3014_v23  ;;  %v3154_v54 = vsel %vm3081_vm8, %v1714_v6, %v1710_v38  ;;  %v1406_v14 = vadd.f32 %v3038_v35, %v1405_v58 }
 0x2bd   : > { %v1158_v7 = vpop.xlane.xlu1 %1157  ;;  %vm1408_vm4 = vweird.f32 %v3038_v35  ;;  %v1728_v63 = vand.u32 2147483648, %v3014_v23  ;;  %v1400_v20 = vsel %vm3091_vm12, %v1399_v26, %v1395_v47  ;;  %v1720_v51 = vmul.f32 %v3078_v62, %v1719_v41 }
 0x2be   : > { %v2226_v27 = vmul.f32 -1.442695, %v1158_v7  ;;  %v2436_v56 = vpop.eup %2435  ;;  %v1418_v61 = vmul.f32 %v3136_v40, %v3070_v1  ;;  %vm1722_vm6 = vweird.f32 %v3014_v23  ;;  %v1734_v3 = vsub.f32 1.0, %v1733_v13  ;;  %vm3176_vm8 = vmor %vm1407_vm0, %vm1408_vm4 }
 0x2bf   : > { %v3165_v0 = vpop.eup %2437  ;;  %v1741_v42 = vand.u32 2147483647, %v3036_v34  ;;  %v1919_v60 = vperm.slane %v3154_v54, %v3025_v28  ;;  %vm1860_vm7 = vcmask 392512   ;;  %vm1723_vm9 = vweird.f32 %v3078_v62 }
 0x2c0   : > { %2441 = vpow2.f32 %v2226_v27  ;;  %v2440_v6 = vpop.eup %2439  ;;  %vm3181_vm10 = vcmp.eq.f32.partialorder %v1726_v53, 8.507059e+37  ;;  %v3186_v9 = vadd.s32 4294967200, %v2906_v32  ;;  %v1855_v15 = vperm.slane %v1400_v20, %v3028_v29  ;;  %vm3198_vm14 = vmor %vm1722_vm6, %vm1723_vm9 }
 0x2c1   : > { %2443 = vrcp.f32 %v3134_v44  ;;  %v1410_v5 = vsel %vm3176_vm8, %v3038_v35, %v1406_v14  ;;  %v1729_v16 = vor.u32 1.1754944e-38, %v1728_v63  ;;  %v3192_v19 = vadd.f32 1.0, %v2436_v56 }
 0x2c2   : > { %2445 = vrcp.f32 %v3143_v48  ;;  %v1721_v24 = vadd.f32 %v3078_v62, %v1720_v51  ;;  %vm1737_vm12 = vweird.f32 %v3036_v34  ;;  %v1419_v25 = vsub.f32 1.0, %v1418_v61 }
 0x2c3   : > { %v1735_v27 = vmul.f32 %v3098_v12, %v1734_v3  ;;  %vm3203_vm15 = vcmp.eq.f32.partialorder %v1741_v42, 8.507059e+37  ;;  %v1743_v35 = vand.u32 2147483648, %v3036_v34  ;;  %v3208_v30 = vadd.f32 1.0, %v2440_v6 }
 0x2c4   : > { %v1415_v33 = vsel %vm3147_vm3, %v1414_v50, %v1410_v5  ;;  %v3215_v23 = vadd.s32 4294967240, %v2906_v32  ;;  %v1433_v58 = vmul.f32 %v3165_v0, %v3096_v11  ;;  %v1857_v41 = vsel %vm1856_vm1, %v1855_v15, %v1853_v59 }
 0x2c5   : > { %v1160_v4 = vpop.xlane.xlu0 %1159  ;;  %vm1738_vm0 = vweird.f32 %v3098_v12  ;;  %v1426_v47 = vand.u32 2147483647, %v3070_v1  ;;  %2447 = vrcp.f32 %v3192_v19  ;;  %v1725_v49 = vsel %vm3198_vm14, %v3078_v62, %v1721_v24 }
 0x2c6   : > { %v2442_v10 = vpop.eup %2441  ;;  %v2227_v43 = vmul.f32 -1.442695, %v1160_v4  ;;  %v1420_v50 = vmul.f32 %v3136_v40, %v1419_v25  ;;  %v1428_v53 = vand.u32 2147483648, %v3070_v1  ;;  %v1859_v14 = vperm.slane %v1415_v33, %v3042_v36  ;;  %vm3239_vm2 = vmor %vm1737_vm12, %vm1738_vm0 }
 0x2c7   : > { %v3210_v31 = vpop.eup %2443  ;;  %v3219_v38 = vadd.f32 1.0, %v2442_v10  ;;  %v1736_v59 = vadd.f32 %v3098_v12, %v1735_v27  ;;  %v1434_v51 = vsub.f32 1.0, %v1433_v58  ;;  %v3248_v3 = vsel %vm3181_vm10, %v1729_v16, %v1725_v49 }
 0x2c8   : > { %v3221_v39 = vpop.eup %2445  ;;  %2449 = vpow2.f32 %v2227_v43  ;;  %v1448_v63 = vmul.f32 %v3210_v31, %v3134_v44  ;;  %v1744_v42 = vor.u32 1.1754944e-38, %v1743_v35  ;;  %vm1422_vm3 = vweird.f32 %v3070_v1 }
 0x2c9   : > { %2451 = vrcp.f32 %v3208_v30  ;;  %v1748_v62 = vmul.f32 %v3221_v39, %v3143_v48  ;;  %v1421_v34 = vadd.f32 %v3136_v40, %v1420_v50  ;;  %vm1423_vm4 = vweird.f32 %v3136_v40 }
 0x2ca   : > { %2453 = vrcp.f32 %v3219_v38  ;;  %vm3253_vm6 = vcmp.eq.f32.partialorder %v1426_v47, 8.507059e+37  ;;  %v3260_v15 = vsel %vm1860_vm7, %v1859_v14, %v1857_v41  ;;  %v1740_v8 = vsel %vm3239_vm2, %v3098_v12, %v1736_v59  ;;  %vm3272_vm8 = vmor %vm1422_vm3, %vm1423_vm4 }
 0x2cb   : > { %v3257_v10 = vpop.eup %2447  ;;  %v1429_v5 = vor.u32 1.1754944e-38, %v1428_v53  ;;  %v1921_v24 = vperm.slane %v3248_v3, %v3058_v52  ;;  %v1749_v25 = vsub.f32 1.0, %v1748_v62  ;;  %v1435_v43 = vmul.f32 %v3165_v0, %v1434_v51 }
 0x2cc   : > { %vm1752_vm9 = vweird.f32 %v3143_v48  ;;  %v1756_v12 = vand.u32 2147483647, %v3143_v48  ;;  %v1758_v35 = vand.u32 2147483648, %v3143_v48  ;;  %v3283_v41 = vsel %vm3203_vm15, %v1744_v42, %v1740_v8 }
 0x2cd   : > { %v1425_v1 = vsel %vm3272_vm8, %v3136_v40, %v1421_v34  ;;  %vm1438_vm10 = vweird.f32 %v3165_v0  ;;  %v1463_v49 = vmul.f32 %v3257_v10, %v3192_v19  ;;  %v1750_v53 = vmul.f32 %v3221_v39, %v1749_v25 }
 0x2ce   : > { %v2450_v16 = vpop.eup %2449  ;;  %v1436_v22 = vadd.f32 %v3165_v0, %v1435_v43  ;;  %v3298_v40 = vor.u32 1.1754944e-38, %v1758_v35  ;;  %vm1437_vm12 = vweird.f32 %v3096_v11  ;;  %v1443_v59 = vand.u32 2147483648, %v3096_v11 }
 0x2cf   : > { %v3268_v26 = vpop.eup %2451  ;;  %v3292_v50 = vadd.f32 1.0, %v2450_v16  ;;  %v1430_v20 = vsel %vm3253_vm6, %v1429_v5, %v1425_v1  ;;  %vm1753_vm14 = vweird.f32 %v3221_v39  ;;  %v1441_v62 = vand.u32 2147483647, %v3096_v11  ;;  %vm3311_vm0 = vmor %vm1437_vm12, %vm1438_vm10 }
 0x2d0   : > { %v3279_v58 = vpop.eup %2453  ;;  %v1478_v14 = vmul.f32 %v3268_v26, %v3208_v30  ;;  %v1456_v51 = vand.u32 2147483647, %v3134_v44  ;;  %vm1864_vm15 = vcmask 458112   ;;  %vm1453_vm2 = vweird.f32 %v3210_v31  ;;  %vm3329_vm3 = vmor %vm1752_vm9, %vm1753_vm14 }
 0x2d1   : > { %v1464_v34 = vsub.f32 1.0, %v1463_v49  ;;  %v3319_v11 = vadd.f32 %v3221_v39, %v1750_v53  ;;  %v1458_v8 = vand.u32 2147483648, %v3134_v44  ;;  %vm3333_vm4 = vcmp.eq.f32.partialorder %v1756_v12, 8.507059e+37 }
 0x2d2   : > { %v1479_v5 = vsub.f32 1.0, %v1478_v14  ;;  %v1444_v25 = vor.u32 1.1754944e-38, %v1443_v59  ;;  %vm1452_vm6 = vweird.f32 %v3134_v44  ;;  %v1863_v35 = vperm.slane %v1430_v20, %v3122_v37 }
 0x2d3   : > { %vm3884_vm8 = vcmask 523712   ;;  %vm1442_vm10 = vcmp.eq.f32.partialorder %v1441_v62, 8.507059e+37  ;;  %vm3343_vm9 = vmor %vm1452_vm6, %vm1453_vm2  ;;  %vm3347_vm12 = vcmp.eq.f32.partialorder %v1456_v51, 8.507059e+37  ;;  %v1755_v49 = vsel %vm3329_vm3, %v3221_v39, %v3319_v11 }
 0x2d4   : > { %vm3883_vm14 = vcmask 589312   ;;  %v1459_v53 = vor.u32 1.1754944e-38, %v1458_v8  ;;  %v1473_v20 = vand.u32 2147483648, %v3192_v19  ;;  %vm1468_vm2 = vweird.f32 %v3257_v10 }
 0x2d5   : > { %vm1483_vm3 = vweird.f32 %v3268_v26  ;;  %vm1498_vm6 = vweird.f32 %v3279_v58  ;;  %v1865_v11 = vsel %vm1864_vm15, %v1863_v35, %v3260_v15  ;;  %v1486_v8 = vand.u32 2147483647, %v3208_v30 }
 0x2d6   : > { %v1474_v35 = vor.u32 1.1754944e-38, %v1473_v20 }
 0x2e5   : > { %v1168_v13 = vpop.xlane.xlu1 %1167 }
 0x2e6   : > { %v2231_v61 = vmul.f32 -1.442695, %v1168_v13 }
 0x2e8   : > { %2455 = vpow2.f32 %v2231_v61 }
 0x2ed   : > { %v1170_v55 = vpop.xlane.xlu2 %1169 }
 0x2ee   : > { %v2232_v4 = vmul.f32 -1.442695, %v1170_v55  ;;  %v1449_v55 = vsub.f32 1.0, %v1448_v63  ;;  %v1493_v63 = vmul.f32 %v3279_v58, %v3219_v38 }
 0x2f0   : > { %2457 = vpow2.f32 %v2232_v4  ;;  %v1450_v13 = vmul.f32 %v3210_v31, %v1449_v55  ;;  %v1494_v43 = vsub.f32 1.0, %v1493_v63 }
 0x2f2   : > { %v1451_v4 = vadd.f32 %v3210_v31, %v1450_v13  ;;  %v1495_v63 = vmul.f32 %v3279_v58, %v1494_v43 }
 0x2f4   : > { %v1455_v1 = vsel %vm3343_vm9, %v3210_v31, %v1451_v4  ;;  %v1471_v31 = vand.u32 2147483647, %v3192_v19 }
 0x2f5   : > { %v1172_v56 = vpop.xlane.xlu2 %1171  ;;  %v1460_v39 = vsel %vm3347_vm12, %v1459_v53, %v1455_v1  ;;  %vm1482_vm12 = vweird.f32 %v3208_v30 }
 0x2f6   : > { %v2233_v7 = vmul.f32 -1.442695, %v1172_v56  ;;  %v2456_v56 = vpop.eup %2455 }
 0x2f7   : > { %v2458_v61 = vpop.eup %2457 }
 0x2f8   : > { %2459 = vpow2.f32 %v2233_v7  ;;  %v1440_v7 = vsel %vm3311_vm0, %v3165_v0, %v1436_v22  ;;  %v3338_v0 = vadd.f32 1.0, %v2456_v56  ;;  %v1480_v22 = vmul.f32 %v3268_v26, %v1479_v5 }
 0x2f9   : > { %v1445_v44 = vsel %vm1442_vm10, %v1444_v25, %v1440_v7  ;;  %vm1467_vm0 = vweird.f32 %v3192_v19  ;;  %vm3882_vm10 = vcmask 654912   ;;  %v1503_v5 = vand.u32 2147483648, %v3219_v38 }
 0x2fa   : > { %v1867_v56 = vperm.slane %v1445_v44, %v3215_v23  ;;  %v1481_v42 = vadd.f32 %v3268_v26, %v1480_v22  ;;  %vm3392_vm9 = vmor %vm1467_vm0, %vm1468_vm2  ;;  %v1871_v25 = vperm.slane %v1460_v39, %v3004_v18  ;;  %vm1497_vm2 = vweird.f32 %v3219_v38 }
 0x2fb   : > { %vm3407_vm0 = vmor %vm1482_vm12, %vm1483_vm3  ;;  %vm3881_vm12 = vcmask 720512  }
 0x2fc   : > { %vm3425_vm3 = vmor %vm1497_vm2, %vm1498_vm6  ;;  %v1869_v44 = vsel %vm3884_vm8, %v1867_v56, %v1865_v11  ;;  %vm3880_vm2 = vcmask 786112  }
 0x2fd   : > { %v1174_v33 = vpop.xlane.xlu1 %1173 }
 0x2fe   : > { %v2234_v47 = vmul.f32 -1.442695, %v1174_v33  ;;  %v2460_v6 = vpop.eup %2459  ;;  %v3351_v33 = vadd.f32 1.0, %v2458_v61 }
 0x2ff   : > { %v3357_v13 = vadd.f32 1.0, %v2460_v6  ;;  %v1496_v6 = vadd.f32 %v3279_v58, %v1495_v63  ;;  %v1873_v63 = vsel %vm3883_vm14, %v1871_v25, %v1869_v44 }
 0x300   : > { %2461 = vpow2.f32 %v2234_v47  ;;  %v1465_v47 = vmul.f32 %v3257_v10, %v1464_v34  ;;  %v1488_v34 = vand.u32 2147483648, %v3208_v30  ;;  %v1501_v30 = vand.u32 2147483647, %v3219_v38 }
 0x301   : > { %2463 = vrcp.f32 %v3292_v50  ;;  %vm1602_vm14 = vweird.f32 %v3357_v13 }
 0x302   : > { %2465 = vrcp.f32 %v3338_v0  ;;  %v1466_v51 = vadd.f32 %v3257_v10, %v1465_v47  ;;  %v1489_v16 = vor.u32 1.1754944e-38, %v1488_v34  ;;  %v1504_v47 = vor.u32 1.1754944e-38, %v1503_v5 }
 0x303   : > { %2467 = vrcp.f32 %v3351_v33  ;;  %vm1502_vm6 = vcmp.eq.f32.partialorder %v1501_v30, 8.507059e+37 }
 0x304   : > { %2469 = vrcp.f32 %v3357_v13  ;;  %v1470_v15 = vsel %vm3392_vm9, %v3257_v10, %v1466_v51  ;;  %v1485_v10 = vsel %vm3407_vm0, %v3268_v26, %v1481_v42  ;;  %vm1472_vm9 = vcmp.eq.f32.partialorder %v1471_v31, 8.507059e+37 }
 0x305   : > { %v1176_v62 = vpop.xlane.xlu0 %1175  ;;  %v1475_v26 = vsel %vm1472_vm9, %v1474_v35, %v1470_v15  ;;  %v1923_v15 = vperm.slane %v3283_v41, %v3104_v17 }
 0x306   : > { %v2462_v27 = vpop.eup %2461  ;;  %v2235_v61 = vmul.f32 -1.442695, %v1176_v62 }
 0x307   : > { %v3364_v14 = vadd.f32 1.0, %v2462_v27  ;;  %v3366_v59 = vpop.eup %2463  ;;  %v3418_v27 = vsel %vm3333_vm4, %v3298_v40, %v1755_v49  ;;  %v1500_v40 = vsel %vm3425_vm3, %v3279_v58, %v1496_v6  ;;  %vm1487_vm4 = vcmp.eq.f32.partialorder %v1486_v8, 8.507059e+37 }
 0x308   : > { %v1508_v4 = vmul.f32 %v3366_v59, %v3292_v50  ;;  %v3399_v55 = vpop.eup %2465  ;;  %v1490_v39 = vsel %vm1487_vm4, %v1489_v16, %v1485_v10  ;;  %v1505_v56 = vsel %vm1502_vm6, %v1504_v47, %v1500_v40  ;;  %v1518_v8 = vand.u32 2147483648, %v3292_v50 }
 0x309   : > { %2471 = vrcp.f32 %v3364_v14  ;;  %v3413_v43 = vpop.eup %2467  ;;  %v1568_v49 = vmul.f32 %v3399_v55, %v3338_v0  ;;  %v1879_v34 = vperm.slane %v1490_v39, %v3058_v52  ;;  %v1883_v7 = vperm.slane %v1505_v56, %v3104_v17 }
 0x30a   : > { %2473 = vpow2.f32 %v2235_v61  ;;  %v1509_v12 = vsub.f32 1.0, %v1508_v4  ;;  %v3429_v38 = vpop.eup %2469  ;;  %v1583_v58 = vmul.f32 %v3413_v43, %v3351_v33  ;;  %v1875_v61 = vperm.slane %v1475_v26, %v3025_v28 }
 0x30b   : > { %v1598_v42 = vmul.f32 %v3429_v38, %v3357_v13  ;;  %v1569_v6 = vsub.f32 1.0, %v1568_v49  ;;  %vm1513_vm0 = vweird.f32 %v3366_v59  ;;  %v1925_v19 = vperm.slane %v3418_v27, %v3186_v9 }
 0x30c   : > { %v1510_v20 = vmul.f32 %v3366_v59, %v1509_v12  ;;  %v1584_v25 = vsub.f32 1.0, %v1583_v58  ;;  %v1877_v30 = vsel %vm3882_vm10, %v1875_v61, %v1873_v63  ;;  %vm1512_vm3 = vweird.f32 %v3292_v50 }
 0x30d   : > { %v1194_v53 = vpop.xlane.xlu0 %1193  ;;  %v1178_v51 = vpop.xlane.xlu2 %1177  ;;  %v1599_v35 = vsub.f32 1.0, %v1598_v42  ;;  %v1570_v10 = vmul.f32 %v3399_v55, %v1569_v6  ;;  %v1881_v12 = vsel %vm3881_vm12, %v1879_v34, %v1877_v30  ;;  %vm3466_vm9 = vmor %vm1512_vm3, %vm1513_vm0  ;;  %v1516_v40 = vand.u32 2147483647, %v3292_v50 }
 0x30e   : > { %v2244_v31 = vmul.f32 -1.442695, %v1194_v53  ;;  %v2236_v4 = vmul.f32 -1.442695, %v1178_v51  ;;  %v3455_v5 = vadd.f32 %v3366_v59, %v1510_v20  ;;  %v3471_v26 = vor.u32 1.1754944e-38, %v1518_v8 }
 0x30f   : > { %v3435_v1 = vpop.eup %2471  ;;  %v1578_v47 = vand.u32 2147483648, %v3338_v0  ;;  %v3475_v49 = vsel %vm3880_vm2, %v1883_v7, %v1881_v12  ;;  %vm1572_vm4 = vweird.f32 %v3338_v0  ;;  %v1585_v63 = vmul.f32 %v3413_v43, %v1584_v25 }
 0x310   : > { %v2474_v22 = vpop.eup %2473  ;;  %2475 = vpow2.f32 %v2244_v31  ;;  %v1613_v11 = vmul.f32 %v3435_v1, %v3364_v14  ;;  %vm1573_vm6 = vweird.f32 %v3399_v55  ;;  %v1576_v56 = vand.u32 2147483647, %v3338_v0 }
 0x311   : > { %v3443_v62 = vadd.f32 1.0, %v2474_v22  ;;  %v1515_v22 = vsel %vm3466_vm9, %v3366_v59, %v3455_v5  ;;  %v1600_v20 = vmul.f32 %v3429_v38, %v1599_v35  ;;  %v1571_v51 = vadd.f32 %v3399_v55, %v1570_v10  ;;  %vm3510_vm12 = vmor %vm1572_vm4, %vm1573_vm6 }
 0x312   : > { %v1614_v48 = vsub.f32 1.0, %v1613_v11  ;;  %vm1587_vm0 = vweird.f32 %v3351_v33  ;;  %v1591_v34 = vand.u32 2147483647, %v3351_v33  ;;  %v1586_v11 = vadd.f32 %v3413_v43, %v1585_v63 }
 0x313   : > { %2477 = vrcp.f32 %v3443_v62  ;;  %vm1588_vm3 = vweird.f32 %v3413_v43  ;;  %vm3502_vm2 = vcmp.eq.f32.partialorder %v1516_v40, 8.507059e+37  ;;  %v1593_v30 = vand.u32 2147483648, %v3351_v33 }
 0x314   : > { %2479 = vpow2.f32 %v2236_v4  ;;  %v1615_v61 = vmul.f32 %v3435_v1, %v1614_v48  ;;  %v1579_v4 = vor.u32 1.1754944e-38, %v1578_v47  ;;  %v1601_v35 = vadd.f32 %v3429_v38, %v1600_v20  ;;  %vm3525_vm6 = vmor %vm1587_vm0, %vm1588_vm3 }
 0x315   : > { %v1162_v50 = vpop.xlane.xlu2 %1161  ;;  %v1180_v6 = vpop.xlane.xlu1 %1179  ;;  %vm1603_vm10 = vweird.f32 %v3429_v38  ;;  %v1575_v48 = vsel %vm3510_vm12, %v3399_v55, %v1571_v51  ;;  %v1608_v12 = vand.u32 2147483648, %v3357_v13  ;;  %vm1618_vm4 = vweird.f32 %v3435_v1 }
 0x316   : > { %v2476_v44 = vpop.eup %2475  ;;  %v2228_v58 = vmul.f32 -1.442695, %v1162_v50  ;;  %v2237_v10 = vmul.f32 -1.442695, %v1180_v6  ;;  %v1606_v40 = vand.u32 2147483647, %v3357_v13  ;;  %v1590_v63 = vsel %vm3525_vm6, %v3413_v43, %v1586_v11  ;;  %vm3537_vm12 = vmor %vm1602_vm14, %vm1603_vm10 }
 0x317   : > { %v3485_v39 = vadd.f32 1.0, %v2476_v44  ;;  %v1616_v44 = vadd.f32 %v3435_v1, %v1615_v61  ;;  %v1623_v47 = vand.u32 2147483648, %v3364_v14  ;;  %vm1617_vm0 = vweird.f32 %v3364_v14 }
 0x318   : > { %v1621_v33 = vand.u32 2147483647, %v3364_v14  ;;  %vm1577_vm3 = vcmp.eq.f32.partialorder %v1576_v56, 8.507059e+37  ;;  %vm1592_vm8 = vcmp.eq.f32.partialorder %v1591_v34, 8.507059e+37  ;;  %v1594_v13 = vor.u32 1.1754944e-38, %v1593_v30  ;;  %vm3548_vm6 = vmor %vm1617_vm0, %vm1618_vm4 }
 0x319   : > { %v3477_v53 = vpop.eup %2477  ;;  %2481 = vrcp.f32 %v3485_v39  ;;  %v1580_v61 = vsel %vm1577_vm3, %v1579_v4, %v1575_v48  ;;  %v1609_v6 = vor.u32 1.1754944e-38, %v1608_v12  ;;  %v1620_v14 = vsel %vm3548_vm6, %v3435_v1, %v1616_v44 }
 0x31a   : > { %v2480_v31 = vpop.eup %2479  ;;  %2483 = vpow2.f32 %v2228_v58  ;;  %v1628_v7 = vmul.f32 %v3477_v53, %v3443_v62  ;;  %v1605_v58 = vsel %vm3537_vm12, %v3429_v38, %v1601_v35  ;;  %v1595_v34 = vsel %vm1592_vm8, %v1594_v13, %v1590_v63 }
 0x31b   : > { %v3492_v42 = vadd.f32 1.0, %v2480_v31  ;;  %vm1607_vm14 = vcmp.eq.f32.partialorder %v1606_v40, 8.507059e+37  ;;  %v1624_v11 = vor.u32 1.1754944e-38, %v1623_v47  ;;  %vm1622_vm10 = vcmp.eq.f32.partialorder %v1621_v33, 8.507059e+37 }
 0x31c   : > { %v1629_v31 = vsub.f32 1.0, %v1628_v7  ;;  %v1610_v25 = vsel %vm1607_vm14, %v1609_v6, %v1605_v58  ;;  %v3573_v12 = vsel %vm3502_vm2, %v3471_v26, %v1515_v22  ;;  %v1902_v44 = vperm.slane %v1580_v61, %v2906_v32 }
 0x31d   : > { %2485 = vrcp.f32 %v3492_v42  ;;  %v1164_v7 = vpop.xlane.xlu1 %1163  ;;  %v1625_v35 = vsel %vm1622_vm10, %v1624_v11, %v1620_v14  ;;  %v1903_v0 = vperm.slane %v1595_v34, %v2913_v46  ;;  %v1905_v47 = vperm.slane %v1610_v25, %v2938_v2  ;;  %v1196_v50 = vpop.xlane.xlu2 %1195 }
 0x31e   : > { %2487 = vpow2.f32 %v2237_v10  ;;  %v1630_v30 = vmul.f32 %v3477_v53, %v1629_v31  ;;  %v2229_v48 = vmul.f32 -1.442695, %v1164_v7  ;;  %v1636_v63 = vand.u32 2147483647, %v3443_v62  ;;  %v1182_v8 = vpop.xlane.xlu0 %1181 }
 0x31f   : > { %v3532_v55 = vpop.eup %2481  ;;  %v1638_v16 = vand.u32 2147483648, %v3443_v62  ;;  %v1907_v59 = vperm.slane %v1625_v35, %v3012_v21  ;;  %vm1633_vm8 = vweird.f32 %v3477_v53  ;;  %v1887_v46 = vperm.slane %v3573_v12, %v3186_v9 }
 0x320   : > { %v2484_v20 = vpop.eup %2483  ;;  %v1763_v1 = vmul.f32 %v3532_v55, %v3485_v39  ;;  %v1631_v5 = vadd.f32 %v3477_v53, %v1630_v30  ;;  %v2245_v22 = vmul.f32 -1.442695, %v1196_v50  ;;  %v1904_v31 = vsel %vm1844_vm11, %v1903_v0, %v1902_v44 }
 0x321   : > { %v3557_v56 = vadd.f32 1.0, %v2484_v20  ;;  %vm1632_vm2 = vweird.f32 %v3443_v62  ;;  %v3594_v21 = vadd.s32 4294967192, %v2906_v32  ;;  %v2238_v20 = vmul.f32 -1.442695, %v1182_v8 }
 0x322   : > { %v1764_v2 = vsub.f32 1.0, %v1763_v1  ;;  %v1906_v13 = vsel %vm1848_vm13, %v1905_v47, %v1904_v31  ;;  %vm3597_vm9 = vmor %vm1632_vm2, %vm1633_vm8  ;;  %vm3601_vm4 = vcmp.eq.f32.partialorder %v1636_v63, 8.507059e+37  ;;  %v1639_v61 = vor.u32 1.1754944e-38, %v1638_v16 }
 0x323   : > { %v3552_v51 = vpop.eup %2485  ;;  %2489 = vrcp.f32 %v3557_v56  ;;  %v1908_v62 = vsel %vm1852_vm5, %v1907_v59, %v1906_v13  ;;  %v1635_v14 = vsel %vm3597_vm9, %v3477_v53, %v1631_v5  ;;  %v1771_v34 = vand.u32 2147483647, %v3485_v39 }
 0x324   : > { %v1643_v38 = vmul.f32 %v3552_v51, %v3492_v42  ;;  %v2488_v4 = vpop.eup %2487  ;;  %2491 = vpow2.f32 %v2229_v48  ;;  %vm1648_vm11 = vweird.f32 %v3552_v51  ;;  %v1765_v7 = vmul.f32 %v3532_v55, %v1764_v2 }
 0x325   : > { %v3577_v40 = vadd.f32 1.0, %v2488_v4  ;;  %v1198_v25 = vpop.xlane.xlu1 %1197  ;;  %v1653_v4 = vand.u32 2147483648, %v3492_v42  ;;  %v1773_v35 = vand.u32 2147483648, %v3485_v39  ;;  %vm1647_vm13 = vweird.f32 %v3492_v42 }
 0x326   : > { %v1644_v10 = vsub.f32 1.0, %v1643_v38  ;;  %v2246_v53 = vmul.f32 -1.442695, %v1198_v25  ;;  %v1651_v1 = vand.u32 2147483647, %v3492_v42  ;;  %v1640_v0 = vsel %vm3601_vm4, %v1639_v61, %v1635_v14  ;;  %vm3627_vm5 = vmor %vm1647_vm13, %vm1648_vm11  ;;  %v1166_v50 = vpop.xlane.xlu0 %1165 }
 0x327   : > { %2493 = vrcp.f32 %v3577_v40  ;;  %vm1767_vm12 = vweird.f32 %v3485_v39  ;;  %vm1768_vm0 = vweird.f32 %v3532_v55  ;;  %v1766_v63 = vadd.f32 %v3532_v55, %v1765_v7 }
 0x328   : > { %v1645_v26 = vmul.f32 %v3552_v51, %v1644_v10  ;;  %2495 = vpow2.f32 %v2245_v22  ;;  %v1654_v5 = vor.u32 1.1754944e-38, %v1653_v4  ;;  %vm3638_vm3 = vcmp.eq.f32.partialorder %v1771_v34, 8.507059e+37  ;;  %vm3650_vm14 = vmor %vm1767_vm12, %vm1768_vm0 }
 0x329   : > { %v3589_v33 = vpop.eup %2489  ;;  %2497 = vpow2.f32 %v2238_v20  ;;  %v1774_v2 = vor.u32 1.1754944e-38, %v1773_v35  ;;  %v2230_v22 = vmul.f32 -1.442695, %v1166_v50  ;;  %v1909_v31 = vperm.slane %v1640_v0, %v3028_v29 }
 0x32a   : > { %v1523_v6 = vmul.f32 %v3589_v33, %v3557_v56  ;;  %v2492_v11 = vpop.eup %2491  ;;  %v1646_v38 = vadd.f32 %v3552_v51, %v1645_v26  ;;  %vm1652_vm6 = vcmp.eq.f32.partialorder %v1651_v1, 8.507059e+37  ;;  %v1531_v43 = vand.u32 2147483647, %v3557_v56 }
 0x32b   : > { %v3619_v10 = vadd.f32 1.0, %v2492_v11  ;;  %v1770_v29 = vsel %vm3650_vm14, %v3532_v55, %v1766_v63  ;;  %vm1527_vm10 = vweird.f32 %v3557_v56  ;;  %v1533_v14 = vand.u32 2147483648, %v3557_v56 }
 0x32c   : > { %v1524_v48 = vsub.f32 1.0, %v1523_v6  ;;  %v1650_v42 = vsel %vm3627_vm5, %v3552_v51, %v1646_v38  ;;  %v1666_v34 = vand.u32 2147483647, %v3577_v40  ;;  %v1668_v11 = vand.u32 2147483648, %v3577_v40 }
 0x32d   : > { %v3615_v30 = vpop.eup %2493  ;;  %2499 = vrcp.f32 %v3619_v10  ;;  %v1655_v13 = vsel %vm1652_vm6, %v1654_v5, %v1650_v42  ;;  %vm1528_vm8 = vweird.f32 %v3589_v33  ;;  %v1910_v4 = vsel %vm1856_vm1, %v1909_v31, %v1908_v62 }
 0x32e   : > { %v1658_v44 = vmul.f32 %v3615_v30, %v3577_v40  ;;  %2501 = vpow2.f32 %v2246_v53  ;;  %v2496_v59 = vpop.eup %2495  ;;  %v1525_v20 = vmul.f32 %v3589_v33, %v1524_v48  ;;  %v1911_v7 = vperm.slane %v1655_v13, %v3042_v36  ;;  %vm3690_vm1 = vmor %vm1527_vm10, %vm1528_vm8 }
 0x32f   : > { %v2498_v8 = vpop.eup %2497  ;;  %v3644_v51 = vadd.f32 1.0, %v2496_v59  ;;  %2503 = vpow2.f32 %v2230_v22  ;;  %v3677_v35 = vsel %vm3638_vm3, %v1774_v2, %v1770_v29  ;;  %vm3679_vm2 = vcmp.eq.f32.partialorder %v1531_v43, 8.507059e+37 }
 0x330   : > { %v1659_v16 = vsub.f32 1.0, %v1658_v44  ;;  %v3655_v61 = vadd.f32 1.0, %v2498_v8  ;;  %v1526_v55 = vadd.f32 %v3589_v33, %v1525_v20  ;;  %v1548_v1 = vand.u32 2147483648, %v3619_v10 }
 0x331   : > { %2505 = vrcp.f32 %v3644_v51  ;;  %vm1663_vm9 = vweird.f32 %v3615_v30  ;;  %v1534_v47 = vor.u32 1.1754944e-38, %v1533_v14  ;;  %vm1662_vm4 = vweird.f32 %v3577_v40 }
 0x332   : > { %v1660_v6 = vmul.f32 %v3615_v30, %v1659_v16  ;;  %2507 = vrcp.f32 %v3655_v61  ;;  %vm3695_vm11 = vcmp.eq.f32.partialorder %v1666_v34, 8.507059e+37  ;;  %v1669_v63 = vor.u32 1.1754944e-38, %v1668_v11  ;;  %vm3710_vm13 = vmor %vm1662_vm4, %vm1663_vm9 }
 0x333   : > { %v3663_v39 = vpop.eup %2499  ;;  %v1912_v50 = vsel %vm1860_vm7, %v1911_v7, %v1910_v4  ;;  %v1927_v59 = vperm.slane %v3677_v35, %v3594_v21  ;;  %v1530_v56 = vsel %vm3690_vm1, %v3589_v33, %v1526_v55  ;;  %vm1542_vm7 = vweird.f32 %v3619_v10 }
 0x334   : > { %v2502_v38 = vpop.eup %2501  ;;  %v1538_v25 = vmul.f32 %v3663_v39, %v3619_v10  ;;  %v1661_v36 = vadd.f32 %v3615_v30, %v1660_v6  ;;  %v1546_v2 = vand.u32 2147483647, %v3619_v10  ;;  %v3718_v22 = vor.u32 1.1754944e-38, %v1548_v1 }
 0x335   : > { %v3686_v44 = vadd.f32 1.0, %v2502_v38  ;;  %v2504_v0 = vpop.eup %2503  ;;  %v3729_v13 = vsel %vm3679_vm2, %v1534_v47, %v1530_v56  ;;  %v1786_v43 = vand.u32 2147483647, %v3644_v51  ;;  %v3733_v29 = vadd.s32 4294967184, %v2906_v32 }
 0x336   : > { %v1539_v48 = vsub.f32 1.0, %v1538_v25  ;;  %v1665_v33 = vsel %vm3710_vm13, %v3615_v30, %v1661_v36  ;;  %v3725_v20 = vadd.f32 1.0, %v2504_v0  ;;  %v1683_v14 = vand.u32 2147483648, %v3655_v61 }
 0x337   : > { %v3699_v16 = vpop.eup %2505  ;;  %2509 = vrcp.f32 %v3686_v44  ;;  %v3738_v30 = vadd.s32 4294967176, %v2906_v32  ;;  %v1670_v34 = vsel %vm3695_vm11, %v1669_v63, %v1665_v33  ;;  %v1788_v38 = vand.u32 2147483648, %v3644_v51 }
 0x338   : > { %v2508_v5 = vpop.eup %2507  ;;  %v1778_v26 = vmul.f32 %v3699_v16, %v3644_v51  ;;  %v1540_v8 = vmul.f32 %v3663_v39, %v1539_v48  ;;  %2511 = vrcp.f32 %v3725_v20  ;;  %vm1543_vm5 = vweird.f32 %v3663_v39 }
 0x339   : > { %v1673_v31 = vmul.f32 %v2508_v5, %v3655_v61  ;;  %vm3745_vm12 = vcmp.eq.f32.partialorder %v1546_v2, 8.507059e+37  ;;  %vm1678_vm0 = vweird.f32 %v2508_v5  ;;  %v1681_v32 = vand.u32 2147483647, %v3655_v61  ;;  %vm3761_vm10 = vmor %vm1542_vm7, %vm1543_vm5 }
 0x33a   : > { %v1779_v58 = vsub.f32 1.0, %v1778_v26  ;;  %v1541_v25 = vadd.f32 %v3663_v39, %v1540_v8  ;;  %vm1782_vm3 = vweird.f32 %v3644_v51  ;;  %vm3752_vm6 = vcmp.eq.f32.partialorder %v1786_v43, 8.507059e+37 }
 0x33b   : > { %v1674_v6 = vsub.f32 1.0, %v1673_v31  ;;  %vm1677_vm14 = vweird.f32 %v3655_v61  ;;  %v1913_v36 = vperm.slane %v1670_v34, %v3122_v37  ;;  %v1684_v62 = vor.u32 1.1754944e-38, %v1683_v14 }
 0x33c   : > { %v1780_v11 = vmul.f32 %v3699_v16, %v1779_v58  ;;  %v1801_v47 = vand.u32 2147483647, %v3686_v44  ;;  %vm1783_vm8 = vweird.f32 %v3699_v16  ;;  %vm1679_vm2 = vmor %vm1677_vm14, %vm1678_vm0  ;;  %v1803_v63 = vand.u32 2147483648, %v3686_v44 }
 0x33d   : > { %v2510_v55 = vpop.eup %2509  ;;  %v1675_v4 = vmul.f32 %v2508_v5, %v1674_v6  ;;  %vm1888_vm9 = vcmask 851712   ;;  %v1789_v56 = vor.u32 1.1754944e-38, %v1788_v38  ;;  %v1545_v10 = vsel %vm3761_vm10, %v3663_v39, %v1541_v25  ;;  %vm3778_vm7 = vmor %vm1782_vm3, %vm1783_vm8 }
 0x33e   : > { %v1793_v1 = vmul.f32 %v2510_v55, %v3686_v44  ;;  %v1781_v42 = vadd.f32 %v3699_v16, %v1780_v11  ;;  %v2512_v37 = vpop.eup %2511  ;;  %vm1682_vm1 = vcmp.eq.f32.partialorder %v1681_v32, 8.507059e+37  ;;  %vm1892_vm4 = vcmask 917312  }
 0x33f   : > { %v1676_v0 = vadd.f32 %v2508_v5, %v1675_v4  ;;  %vm1798_vm11 = vweird.f32 %v2510_v55  ;;  %v1553_v33 = vmul.f32 %v2512_v37, %v3725_v20  ;;  %vm1896_vm13 = vcmask 982912  }
 0x340   : > { %v1794_v61 = vsub.f32 1.0, %v1793_v1  ;;  %v1914_v8 = vsel %vm1864_vm15, %v1913_v36, %v1912_v50  ;;  %vm1797_vm5 = vweird.f32 %v3686_v44  ;;  %vm3784_vm0 = vcmp.eq.f32.partialorder %v1801_v47, 8.507059e+37 }
 0x341   : > { %v1680_v40 = vsel %vm1679_vm2, %v2508_v5, %v1676_v0  ;;  %v1785_v50 = vsel %vm3778_vm7, %v3699_v16, %v1781_v42  ;;  %v1804_v43 = vor.u32 1.1754944e-38, %v1803_v63  ;;  %v1554_v6 = vsub.f32 1.0, %v1553_v33  ;;  %vm1799_vm3 = vmor %vm1797_vm5, %vm1798_vm11 }
 0x342   : > { %v1685_v26 = vsel %vm1682_vm1, %v1684_v62, %v1680_v40  ;;  %v1795_v2 = vmul.f32 %v2510_v55, %v1794_v61  ;;  %vm3982_vm15 = vcmask 523712   ;;  %v1561_v14 = vand.u32 2147483647, %v3725_v20 }
 0x343   : > { %v1915_v39 = vperm.slane %v1685_v26, %v3215_v23  ;;  %v1563_v23 = vand.u32 2147483648, %v3725_v20  ;;  %v1550_v44 = vsel %vm3745_vm12, %v3718_v22, %v1545_v10  ;;  %vm3983_vm14 = vcmask 589312  }
 0x344   : > { %v1796_v58 = vadd.f32 %v2510_v55, %v1795_v2  ;;  %v1555_v11 = vmul.f32 %v2512_v37, %v1554_v6  ;;  %vm1558_vm10 = vweird.f32 %v2512_v37  ;;  %v1891_v38 = vperm.slane %v3729_v13, %v3594_v21 }
 0x345   : > { %v1916_v51 = vsel %vm3982_vm15, %v1915_v39, %v1914_v8  ;;  %v1790_v25 = vsel %vm3752_vm6, %v1789_v56, %v1785_v50  ;;  %vm3984_vm12 = vcmask 654912   ;;  %vm1557_vm8 = vweird.f32 %v3725_v20 }
 0x346   : > { %v1918_v16 = vsel %vm3983_vm14, %v1917_v57, %v1916_v51  ;;  %v1800_v34 = vsel %vm1799_vm3, %v2510_v55, %v1796_v58  ;;  %v1556_v18 = vadd.f32 %v2512_v37, %v1555_v11  ;;  %vm1900_vm2 = vcmask 1048512   ;;  %vm1559_vm6 = vmor %vm1557_vm8, %vm1558_vm10 }
 0x347   : > { %v1805_v4 = vsel %vm3784_vm0, %v1804_v43, %v1800_v34  ;;  %v1920_v22 = vsel %vm3984_vm12, %v1919_v60, %v1918_v16  ;;  %vm3985_vm1 = vcmask 720512   ;;  %v1564_v57 = vor.u32 1.1754944e-38, %v1563_v23 }
 0x348   : > { %v1922_v45 = vsel %vm3985_vm1, %v1921_v24, %v1920_v22  ;;  %v1895_v13 = vperm.slane %v1550_v44, %v3733_v29  ;;  %vm3986_vm11 = vcmask 786112   ;;  %v1931_v54 = vperm.slane %v1805_v4, %v3738_v30 }
 0x349   : > { %v1924_v28 = vsel %vm3986_vm11, %v1923_v15, %v1922_v45  ;;  %v1560_v60 = vsel %vm1559_vm6, %v2512_v37, %v1556_v18  ;;  %vm1562_vm7 = vcmp.eq.f32.partialorder %v1561_v14, 8.507059e+37  ;;  %v1929_v3 = vperm.slane %v1790_v25, %v3733_v29 }
 0x34a   : > { %v1926_v52 = vsel %vm1888_vm9, %v1925_v19, %v1924_v28  ;;  %v1565_v24 = vsel %vm1562_vm7, %v1564_v57, %v1560_v60  ;;  %v1889_v17 = vsel %vm1888_vm9, %v1887_v46, %v3475_v49  ;;  %vm1933_vm5 = vcmask 1041409  }
 0x34b   : > { %v1928_v41 = vsel %vm1892_vm4, %v1927_v59, %v1926_v52  ;;  %v1893_v27 = vsel %vm1892_vm4, %v1891_v38, %v1889_v17  ;;  %v1899_v15 = vperm.slane %v1565_v24, %v3738_v30 }
 0x34c   : > { %v1930_v19 = vsel %vm1896_vm13, %v1929_v3, %v1928_v41  ;;  %v1897_v9 = vsel %vm1896_vm13, %v1895_v13, %v1893_v27 }
 0x34d   : > { %v1932_v49 = vsel %vm1900_vm2, %v1931_v54, %v1930_v19  ;;  %v1901_v12 = vsel %vm1900_vm2, %v1899_v15, %v1897_v9 }
 0x34e   : > { %v1934_v46 = vsel %vm1933_vm5, %v1932_v49, %v1901_v12 }
 0x34f   : > { %1936 = vst [vmem:[%s221_s26] sm:$0x3] %v1934_v46 }
 0x350   : > { %2630 = shalt.err (!%p2627_p10)
}
 0x351   : > { %2326 = dma.vmem_to_hbm [thread:$0]  (%p2768_p3), %s1951_s27, 32, %s1953_s28, %s1938_s4  }
 0x352 PF: > { %s1964_s11 = sand.u32 1, %s2661_s12   ;;  %p3987_p12 = scmp.ge.s32.totalorder %s2673_s15, 2 }
 0x353   : > { %s1965_s25 = scalar_lea.sflag [#allocation4], %s1964_s11 }
 0x354   : > { %p2340_p13 = pnand %p3987_p12, %p2734_p6 }
 0x356   : > { %p2341_p0 = pneg %p2340_p13 }
 0x358   : > { %2656 = dma.done.wait (%p2341_p0), %s1965_s25, 32  }
 0x359   : > { %2658 = vsyncadd (%p2341_p0), %s1965_s25, 4294967264  ;;  %p17_p5 = scmp.ge.s32.totalorder %s2758_s6, 4   ;;  %s3988_s12 = smov %s2665_s13 }
 0x35a   : > { %s3989_s13 = smov %s2669_s14  ;;  %s3990_s14 = smov %s2774_s10 }
 0x35b   : > { %s3991_s15 = smov %s2758_s6  ;;  %19 = sbr.rel (!%p17_p5) target bundleno = 6 (0x6), region = 87 }
 0x360   :  { %1971 = vsyncpa [#allocation3], 1 }
 0x361   :  { %1973 = vsyncpa [#allocation3 + $0x1], 1 }
 0x362   :  { %1974 = vsyncpa [#allocation6], 1 }
 0x363   :  { %1975 = vsyncpa [#allocation4], 1 }
 0x364   :  { %1977 = vsyncpa [#allocation4 + $0x1], 1 }

</bundles_post_ra>
